<compile_context>
chip_gen: v6e
topology: v6e:2x2x1
jax: 0.10.0
libtpu: 0.0.40
codegen_flags: <defaults>
</compile_context>

<pallas_src>
import functools

import jax
import jax.numpy as jnp
from jax import lax
from jax.experimental import pallas as pl
from jax.experimental.pallas import tpu as pltpu

EPS = 1e-5
LANE = 128


def _round_up(x, m):
    return (x + m - 1) // m * m


# ---------------------------------------------------------------------------
# Kernel 1: 3x3x3 conv (27 accumulated matmuls) + per-tile BN partial stats
# ---------------------------------------------------------------------------
def _conv_stats_kernel(x_ref, w_ref, y_ref, sum_ref, ssq_ref, acc_ref, *, dil, Ho, Wo):
    kd = pl.program_id(2)

    @pl.when(kd == 0)
    def _init():
        acc_ref[...] = jnp.zeros_like(acc_ref)

    xs = x_ref[0]                       # (Hp, Wp, Cp) bf16, one padded depth slice
    Cp = xs.shape[-1]
    Pp = acc_ref.shape[-1]

    contrib = jnp.zeros((Ho * Wo, Pp), jnp.float32)
    for kh in range(3):
        for kw in range(3):
            win = lax.slice(
                xs,
                (kh * dil, kw * dil, 0),
                (kh * dil + Ho, kw * dil + Wo, Cp),
            ).reshape(Ho * Wo, Cp)
            w_t = w_ref[kd * 9 + kh * 3 + kw]      # (Cp, Pp) bf16 tap matrix
            contrib += jnp.dot(win, w_t, preferred_element_type=jnp.float32)
    acc_ref[...] += contrib

    @pl.when(kd == pl.num_programs(2) - 1)
    def _finalize():
        y = acc_ref[...]
        y_ref[0] = y.astype(y_ref.dtype)
        sum_ref[0] = jnp.sum(y, axis=0, keepdims=True)
        ssq_ref[0] = jnp.sum(y * y, axis=0, keepdims=True)


def _conv3d_with_stats(slab, w_taps, *, dil):
    """slab: (N, Dp, Hp, Wp, Cp) bf16 spatially padded, channels-last, channel-padded.
    w_taps: (27, Cp, Pp) bf16.  Returns y (N*Do, Ho*Wo, Pp) bf16 plus per-(n,do)
    partial sum / sum-of-squares (N*Do, 1, Pp) f32 for the BatchNorm statistics."""
    N, Dp, Hp, Wp, Cp = slab.shape
    Pp = w_taps.shape[-1]
    Do, Ho, Wo = Dp - 2 * dil, Hp - 2 * dil, Wp - 2 * dil

    slab4 = slab.reshape(N * Dp, Hp, Wp, Cp)
    kernel = functools.partial(_conv_stats_kernel, dil=dil, Ho=Ho, Wo=Wo)

    # VMEM budget / scheduling hints.
    in_blk = Hp * Wp * Cp * 2
    out_blk = Ho * Wo * Pp * 2
    w_bytes = 27 * Cp * Pp * 2
    acc_bytes = Ho * Wo * Pp * 4
    est = 2 * (in_blk + out_blk) + w_bytes + acc_bytes + 4 * Pp * 4
    vmem_limit = int(min(max(2 * est + (8 << 20), 32 << 20), 48 << 20))
    flops = 2 * N * Do * Ho * Wo * (27 * Cp) * Pp
    bytes_accessed = 3 * slab.size * 2 + w_taps.size * 2 + N * Do * Ho * Wo * Pp * 2

    return pl.pallas_call(
        kernel,
        out_shape=(
            jax.ShapeDtypeStruct((N * Do, Ho * Wo, Pp), jnp.bfloat16),
            jax.ShapeDtypeStruct((N * Do, 1, Pp), jnp.float32),
            jax.ShapeDtypeStruct((N * Do, 1, Pp), jnp.float32),
        ),
        grid_spec=pltpu.PrefetchScalarGridSpec(
            num_scalar_prefetch=0,
            grid=(N, Do, 3),
            in_specs=[
                pl.BlockSpec((1, Hp, Wp, Cp),
                             lambda n, d, k: (n * Dp + d + k * dil, 0, 0, 0)),
                pl.BlockSpec((27, Cp, Pp), lambda n, d, k: (0, 0, 0)),
            ],
            out_specs=[
                pl.BlockSpec((1, Ho * Wo, Pp), lambda n, d, k: (n * Do + d, 0, 0)),
                pl.BlockSpec((1, 1, Pp), lambda n, d, k: (n * Do + d, 0, 0)),
                pl.BlockSpec((1, 1, Pp), lambda n, d, k: (n * Do + d, 0, 0)),
            ],
            scratch_shapes=[pltpu.VMEM((Ho * Wo, Pp), jnp.float32)],
        ),
        compiler_params=pltpu.CompilerParams(
            dimension_semantics=("parallel", "parallel", "arbitrary"),
            vmem_limit_bytes=vmem_limit,
        ),
        cost_estimate=pl.CostEstimate(
            flops=flops, transcendentals=0, bytes_accessed=bytes_accessed),
    )(slab4, w_taps)


# ---------------------------------------------------------------------------
# Kernel 2: fused BN1-apply + ReLU + spatial zero-pad -> padded conv2 slab
# ---------------------------------------------------------------------------
def _bn_act_pad_kernel(y_ref, sc_ref, sh_ref, o_ref, *, D, H, W, dil):
    dp = pl.program_id(1)
    # Zero the whole padded depth slice (covers the H/W halo and the depth halo).
    o_ref[...] = jnp.zeros_like(o_ref)

    @pl.when((dp >= dil) & (dp < dil + D))
    def _interior():
        y = y_ref[0].astype(jnp.float32)                       # (H*W, Pp)
        a = jnp.maximum(y * sc_ref[...] + sh_ref[...], 0.0)
        o_ref[:, dil:dil + H, dil:dil + W, :] = (
            a.reshape(1, H, W, -1).astype(o_ref.dtype))


def _bn_act_pad(y, scale, shift, *, N, D, H, W, dil):
    """y: (N*D, H*W, Pp) conv1 output (bf16).  Returns the spatially zero-padded,
    BN+ReLU-activated slab (N, Dp, Hp, Wp, Pp) bf16 ready for conv2 (no extra XLA
    pad pass over HBM)."""
    Pp = y.shape[-1]
    Dp, Hp, Wp = D + 2 * dil, H + 2 * dil, W + 2 * dil
    kernel = functools.partial(_bn_act_pad_kernel, D=D, H=H, W=W, dil=dil)

    out = pl.pallas_call(
        kernel,
        out_shape=jax.ShapeDtypeStruct((N * Dp, Hp, Wp, Pp), jnp.bfloat16),
        grid_spec=pltpu.PrefetchScalarGridSpec(
            num_scalar_prefetch=0,
            grid=(N, Dp),
            in_specs=[
                pl.BlockSpec(
                    (1, H * W, Pp),
                    lambda n, dp: (n * D + jnp.clip(dp - dil, 0, D - 1), 0, 0)),
                pl.BlockSpec((1, Pp), lambda n, dp: (0, 0)),
                pl.BlockSpec((1, Pp), lambda n, dp: (0, 0)),
            ],
            out_specs=pl.BlockSpec((1, Hp, Wp, Pp),
                                   lambda n, dp: (n * Dp + dp, 0, 0, 0)),
        ),
        compiler_params=pltpu.CompilerParams(
            dimension_semantics=("parallel", "parallel")),
    )(y, scale, shift)
    return out.reshape(N, Dp, Hp, Wp, Pp)


# ---------------------------------------------------------------------------
# Kernel 3: fused BN2-apply + residual + ReLU, row-tiled
# ---------------------------------------------------------------------------
def _bn_res_act_kernel(y_ref, r_ref, sc_ref, sh_ref, o_ref):
    y = y_ref[...].astype(jnp.float32)
    r = r_ref[...].astype(jnp.float32)
    o_ref[...] = jnp.maximum(y * sc_ref[...] + sh_ref[...] + r, 0.0).astype(o_ref.dtype)


def _tiled_rows_call(kernel, row_inputs, vec_inputs, out_dtype):
    """Row-tiled, pipelined elementwise call: per-row tensors + (1, Pp) vectors."""
    R, Pp = row_inputs[0].shape
    tile_r = min(1024, _round_up(R, 8))
    Rp = pl.cdiv(R, tile_r) * tile_r
    if Rp != R:
        row_inputs = [jnp.pad(a, ((0, Rp - R), (0, 0))) for a in row_inputs]

    row_spec = pl.BlockSpec((tile_r, Pp), lambda i: (i, 0))
    vec_spec = pl.BlockSpec((1, Pp), lambda i: (0, 0))
    out = pl.pallas_call(
        kernel,
        out_shape=jax.ShapeDtypeStruct((Rp, Pp), out_dtype),
        grid_spec=pltpu.PrefetchScalarGridSpec(
            num_scalar_prefetch=0,
            grid=(Rp // tile_r,),
            in_specs=[row_spec] * len(row_inputs) + [vec_spec] * len(vec_inputs),
            out_specs=row_spec,
        ),
        compiler_params=pltpu.CompilerParams(dimension_semantics=("parallel",)),
    )(*row_inputs, *vec_inputs)
    return out[:R]


# ---------------------------------------------------------------------------
# Glue: weight packing, BN finalize, module forward
# ---------------------------------------------------------------------------
def _pack_weights(w, Cp, Pp):
    """PyTorch conv3d weights (P, Cin, 3, 3, 3) -> (27, Cp, Pp) bf16 tap matrices."""
    P, Cin = w.shape[0], w.shape[1]
    taps = jnp.transpose(w, (2, 3, 4, 1, 0)).reshape(27, Cin, P)   # t = kd*9+kh*3+kw
    taps = jnp.pad(taps, ((0, 0), (0, Cp - Cin), (0, Pp - P)))
    return taps.astype(jnp.bfloat16)


def _bn_finalize(psum, pssq, gamma, beta, count):
    """Training-mode (batch) BN folded to per-channel scale/shift."""
    Pp = psum.shape[-1]
    g = jnp.pad(gamma.astype(jnp.float32), (0, Pp - gamma.shape[0]))
    b = jnp.pad(beta.astype(jnp.float32), (0, Pp - beta.shape[0]))
    tot = jnp.sum(psum.reshape(-1, Pp), axis=0)
    tot2 = jnp.sum(pssq.reshape(-1, Pp), axis=0)
    mean = tot / count
    var = jnp.maximum(tot2 / count - mean * mean, 0.0)
    scale = g * lax.rsqrt(var + EPS)
    shift = b - mean * scale
    return scale.reshape(1, Pp), shift.reshape(1, Pp)


@functools.partial(jax.jit, static_argnames=("stride", "dilation"))
def basic_block_forward(x, params, *, stride=1, dilation=1):
    """x: (N, C, D, H, W) NCDHW float32 -> (N, planes, D, H, W)."""
    if stride != 1:
        # TODO(synk): stride > 1 needs the `downsample` branch (None in this config).
        raise NotImplementedError("downsample=None path requires stride == 1")
    N, C, D, H, W = x.shape
    P = params["w1"].shape[0]
    assert params["w1"].shape[1] == C and params["w2"].shape[0] == P
    assert C == P, "downsample=None requires inplanes == planes"
    dil = dilation
    Cp = _round_up(C, LANE)
    Pp = _round_up(P, LANE)
    R = N * D * H * W
    pad_sp = ((0, 0), (dil, dil), (dil, dil), (dil, dil), (0, 0))

    # NCDHW -> channels-last, channel-padded (done once at the module boundary).
    x_cl = jnp.transpose(x, (0, 2, 3, 4, 1))
    x_cl = jnp.pad(x_cl, ((0, 0),) * 4 + ((0, Cp - C),))

    # --- stage 1: conv1 -> bn1 stats -> fused bn1-apply + relu + re-pad ----
    slab1 = jnp.pad(x_cl, pad_sp).astype(jnp.bfloat16)
    w1 = _pack_weights(params["w1"], Cp, Pp)
    y1, s1, q1 = _conv3d_with_stats(slab1, w1, dil=dil)
    sc1, sh1 = _bn_finalize(s1, q1, params["g1"], params["b1"], R)
    slab2 = _bn_act_pad(y1, sc1, sh1, N=N, D=D, H=H, W=W, dil=dil)

    # --- stage 2: conv2 -> bn2 stats -> bn2-apply + residual + relu --------
    w2 = _pack_weights(params["w2"], Pp, Pp)
    y2, s2, q2 = _conv3d_with_stats(slab2, w2, dil=dil)
    sc2, sh2 = _bn_finalize(s2, q2, params["g2"], params["b2"], R)
    res_rows = x_cl.reshape(R, Cp)          # downsample is None -> residual = x
    out_rows = _tiled_rows_call(_bn_res_act_kernel,
                                [y2.reshape(R, Pp), res_rows], [sc2, sh2],
                                jnp.float32)

    out = out_rows.reshape(N, D, H, W, Pp)[..., :P]
    return jnp.transpose(out, (0, 4, 1, 2, 3))


# ---------------------------------------------------------------------------
# Pure-JAX reference (correctness check)
# ---------------------------------------------------------------------------
def _conv3(inp, w, stride, dilation):
    return lax.conv_general_dilated(
        inp, w,
        window_strides=(stride,) * 3,
        padding=[(dilation, dilation)] * 3,
        rhs_dilation=(dilation,) * 3,
        dimension_numbers=("NCDHW", "OIDHW", "NCDHW"),
    )


def _bn_train(y, g, b):
    mean = jnp.mean(y, axis=(0, 2, 3, 4), keepdims=True)
    var = jnp.mean(jnp.square(y - mean), axis=(0, 2, 3, 4), keepdims=True)
    return (y - mean) * lax.rsqrt(var + EPS) * g.reshape(1, -1, 1, 1, 1) + b.reshape(
        1, -1, 1, 1, 1)


def reference_forward(x, params, *, stride=1, dilation=1):
    out = _conv3(x, params["w1"], stride, dilation)
    out = jnp.maximum(_bn_train(out, params["g1"], params["b1"]), 0.0)
    out = _conv3(out, params["w2"], 1, dilation)
    out = _bn_train(out, params["g2"], params["b2"])
    out = out + x  # downsample is None
    return jnp.maximum(out, 0.0)


# ---------------------------------------------------------------------------
if __name__ == "__main__":
    key = jax.random.PRNGKey(0)
    k_x, k_w1, k_w2, k_g1, k_b1, k_g2, k_b2 = jax.random.split(key, 7)

    N, inplanes, planes = 2, 4, 4
    D, H, W = 4, 8, 8
    stride, dilation = 1, 1  # downsample=None path

    x = jax.random.normal(k_x, (N, inplanes, D, H, W), dtype=jnp.float32)

    params = {
        "w1": 0.1 * jax.random.normal(k_w1, (planes, inplanes, 3, 3, 3), jnp.float32),
        "w2": 0.1 * jax.random.normal(k_w2, (planes, planes, 3, 3, 3), jnp.float32),
        "g1": 1.0 + 0.1 * jax.random.normal(k_g1, (planes,), jnp.float32),
        "b1": 0.1 * jax.random.normal(k_b1, (planes,), jnp.float32),
        "g2": 1.0 + 0.1 * jax.random.normal(k_g2, (planes,), jnp.float32),
        "b2": 0.1 * jax.random.normal(k_b2, (planes,), jnp.float32),
    }

    out = basic_block_forward(x, params, stride=stride, dilation=dilation)
    out = jax.block_until_ready(out)

    ref = jax.block_until_ready(
        reference_forward(x, params, stride=stride, dilation=dilation))

    assert out.shape == ref.shape == (N, planes, D, H, W), (out.shape, ref.shape)
    assert bool(jnp.all(jnp.isfinite(out)))
    assert bool(jnp.allclose(out, ref, rtol=5e-2, atol=5e-2)), float(
        jnp.max(jnp.abs(out - ref)))

    print("KERNEL_OK")
</pallas_src>

<mosaic_0001>
module attributes {stable_mosaic.version = 11 : i64} {
  func.func @_conv_stats_kernel(%arg0: i32, %arg1: i32, %arg2: i32, %arg3: memref<1x10x10x128xbf16, #tpu.memory_space<vmem>>, %arg4: memref<27x128x128xbf16, #tpu.memory_space<vmem>>, %arg5: memref<1x64x128xbf16, #tpu.memory_space<vmem>>, %arg6: memref<1x1x128xf32, #tpu.memory_space<vmem>>, %arg7: memref<1x1x128xf32, #tpu.memory_space<vmem>>, %arg8: memref<64x128xf32, #tpu.memory_space<vmem>>) attributes {dimension_semantics = [#tpu.dimension_semantics<parallel>, #tpu.dimension_semantics<parallel>, #tpu.dimension_semantics<arbitrary>], iteration_bounds = array<i64: 2, 4, 3>, scalar_prefetch = 0 : i64, scratch_operands = 1 : i64, tpu.core_type = #tpu.core_type<tc>, window_params = [{transform_indices = @transform_0, window_bounds = array<i64: 1, 10, 10, 128>}, {pipeline_mode = #tpu.pipeline_mode<synchronous>, transform_indices = @transform_1, window_bounds = array<i64: 27, 128, 128>}, {transform_indices = @transform_2, window_bounds = array<i64: 1, 64, 128>}, {transform_indices = @transform_3, window_bounds = array<i64: 1, 1, 128>}, {transform_indices = @transform_4, window_bounds = array<i64: 1, 1, 128>}]} {
    %c0_i32 = arith.constant 0 : i32
    %0 = arith.cmpi eq, %arg2, %c0_i32 : i32
    %1 = arith.extui %0 : i1 to i32
    %c0_i32_0 = arith.constant 0 : i32
    %2 = arith.cmpi ne, %1, %c0_i32_0 : i32
    scf.if %2 {
      %cst_59 = arith.constant 0.000000e+00 : f32
      %102 = vector.broadcast %cst_59 : f32 to vector<64x128xf32>
      %c0_60 = arith.constant 0 : index
      %c0_61 = arith.constant 0 : index
      %103 = vector.load %arg8[%c0_60, %c0_61] : memref<64x128xf32, #tpu.memory_space<vmem>>, vector<64x128xf32>
      tpu.vector_store %arg8[%c0_60, %c0_61], %102 {strides = array<i32>} : memref<64x128xf32, #tpu.memory_space<vmem>>, vector<64x128xf32>,
    } else {
    }
    %c0 = arith.constant 0 : index
    %c0_1 = arith.constant 0 : index
    %c0_2 = arith.constant 0 : index
    %c0_3 = arith.constant 0 : index
    %3 = vector.load %arg3[%c0, %c0_1, %c0_2, %c0_3] : memref<1x10x10x128xbf16, #tpu.memory_space<vmem>>, vector<1x10x10x128xbf16>
    %4 = vector.shape_cast %3 : vector<1x10x10x128xbf16> to vector<10x10x128xbf16>
    %cst = arith.constant 0.000000e+00 : f32
    %5 = vector.broadcast %cst : f32 to vector<64x128xf32>
    %6 = vector.extract_strided_slice %4 {offsets = [0, 0, 0], sizes = [8, 8, 128], strides = [1, 1, 1]} : vector<10x10x128xbf16> to vector<8x8x128xbf16>
    %7 = vector.shape_cast %6 : vector<8x8x128xbf16> to vector<64x128xbf16>
    %c9_i32 = arith.constant 9 : i32
    %8 = arith.muli %arg2, %c9_i32 : i32
    %c0_i32_4 = arith.constant 0 : i32
    %9 = arith.addi %8, %c0_i32_4 : i32
    %c0_i32_5 = arith.constant 0 : i32
    %10 = arith.addi %9, %c0_i32_5 : i32
    %11 = arith.index_cast %10 : i32 to index
    %c0_6 = arith.constant 0 : index
    %c0_7 = arith.constant 0 : index
    %12 = vector.load %arg4[%11, %c0_6, %c0_7] : memref<27x128x128xbf16, #tpu.memory_space<vmem>>, vector<1x128x128xbf16>
    %13 = vector.shape_cast %12 : vector<1x128x128xbf16> to vector<128x128xbf16>
    %cst_8 = arith.constant dense<0.000000e+00> : vector<64x128xf32>
    %14 = tpu.matmul %7, %13, %cst_8 {dimension_numbers = #tpu.dot_dimension_numbers<[1], [0], [0], [1], [0, 0, 1, 1], [], []>} : vector<64x128xbf16>, vector<128x128xbf16>, vector<64x128xf32> -> vector<64x128xf32>
    %15 = arith.addf %5, %14 : vector<64x128xf32>
    %16 = vector.extract_strided_slice %4 {offsets = [0, 1, 0], sizes = [8, 8, 128], strides = [1, 1, 1]} : vector<10x10x128xbf16> to vector<8x8x128xbf16>
    %17 = vector.shape_cast %16 : vector<8x8x128xbf16> to vector<64x128xbf16>
    %c9_i32_9 = arith.constant 9 : i32
    %18 = arith.muli %arg2, %c9_i32_9 : i32
    %c0_i32_10 = arith.constant 0 : i32
    %19 = arith.addi %18, %c0_i32_10 : i32
    %c1_i32 = arith.constant 1 : i32
    %20 = arith.addi %19, %c1_i32 : i32
    %21 = arith.index_cast %20 : i32 to index
    %c0_11 = arith.constant 0 : index
    %c0_12 = arith.constant 0 : index
    %22 = vector.load %arg4[%21, %c0_11, %c0_12] : memref<27x128x128xbf16, #tpu.memory_space<vmem>>, vector<1x128x128xbf16>
    %23 = vector.shape_cast %22 : vector<1x128x128xbf16> to vector<128x128xbf16>
    %cst_13 = arith.constant dense<0.000000e+00> : vector<64x128xf32>
    %24 = tpu.matmul %17, %23, %cst_13 {dimension_numbers = #tpu.dot_dimension_numbers<[1], [0], [0], [1], [0, 0, 1, 1], [], []>} : vector<64x128xbf16>, vector<128x128xbf16>, vector<64x128xf32> -> vector<64x128xf32>
    %25 = arith.addf %15, %24 : vector<64x128xf32>
    %26 = vector.extract_strided_slice %4 {offsets = [0, 2, 0], sizes = [8, 8, 128], strides = [1, 1, 1]} : vector<10x10x128xbf16> to vector<8x8x128xbf16>
    %27 = vector.shape_cast %26 : vector<8x8x128xbf16> to vector<64x128xbf16>
    %c9_i32_14 = arith.constant 9 : i32
    %28 = arith.muli %arg2, %c9_i32_14 : i32
    %c0_i32_15 = arith.constant 0 : i32
    %29 = arith.addi %28, %c0_i32_15 : i32
    %c2_i32 = arith.constant 2 : i32
    %30 = arith.addi %29, %c2_i32 : i32
    %31 = arith.index_cast %30 : i32 to index
    %c0_16 = arith.constant 0 : index
    %c0_17 = arith.constant 0 : index
    %32 = vector.load %arg4[%31, %c0_16, %c0_17] : memref<27x128x128xbf16, #tpu.memory_space<vmem>>, vector<1x128x128xbf16>
    %33 = vector.shape_cast %32 : vector<1x128x128xbf16> to vector<128x128xbf16>
    %cst_18 = arith.constant dense<0.000000e+00> : vector<64x128xf32>
    %34 = tpu.matmul %27, %33, %cst_18 {dimension_numbers = #tpu.dot_dimension_numbers<[1], [0], [0], [1], [0, 0, 1, 1], [], []>} : vector<64x128xbf16>, vector<128x128xbf16>, vector<64x128xf32> -> vector<64x128xf32>
    %35 = arith.addf %25, %34 : vector<64x128xf32>
    %36 = vector.extract_strided_slice %4 {offsets = [1, 0, 0], sizes = [8, 8, 128], strides = [1, 1, 1]} : vector<10x10x128xbf16> to vector<8x8x128xbf16>
    %37 = vector.shape_cast %36 : vector<8x8x128xbf16> to vector<64x128xbf16>
    %c9_i32_19 = arith.constant 9 : i32
    %38 = arith.muli %arg2, %c9_i32_19 : i32
    %c3_i32 = arith.constant 3 : i32
    %39 = arith.addi %38, %c3_i32 : i32
    %c0_i32_20 = arith.constant 0 : i32
    %40 = arith.addi %39, %c0_i32_20 : i32
    %41 = arith.index_cast %40 : i32 to index
    %c0_21 = arith.constant 0 : index
    %c0_22 = arith.constant 0 : index
    %42 = vector.load %arg4[%41, %c0_21, %c0_22] : memref<27x128x128xbf16, #tpu.memory_space<vmem>>, vector<1x128x128xbf16>
    %43 = vector.shape_cast %42 : vector<1x128x128xbf16> to vector<128x128xbf16>
    %cst_23 = arith.constant dense<0.000000e+00> : vector<64x128xf32>
    %44 = tpu.matmul %37, %43, %cst_23 {dimension_numbers = #tpu.dot_dimension_numbers<[1], [0], [0], [1], [0, 0, 1, 1], [], []>} : vector<64x128xbf16>, vector<128x128xbf16>, vector<64x128xf32> -> vector<64x128xf32>
    %45 = arith.addf %35, %44 : vector<64x128xf32>
    %46 = vector.extract_strided_slice %4 {offsets = [1, 1, 0], sizes = [8, 8, 128], strides = [1, 1, 1]} : vector<10x10x128xbf16> to vector<8x8x128xbf16>
    %47 = vector.shape_cast %46 : vector<8x8x128xbf16> to vector<64x128xbf16>
    %c9_i32_24 = arith.constant 9 : i32
    %48 = arith.muli %arg2, %c9_i32_24 : i32
    %c3_i32_25 = arith.constant 3 : i32
    %49 = arith.addi %48, %c3_i32_25 : i32
    %c1_i32_26 = arith.constant 1 : i32
    %50 = arith.addi %49, %c1_i32_26 : i32
    %51 = arith.index_cast %50 : i32 to index
    %c0_27 = arith.constant 0 : index
    %c0_28 = arith.constant 0 : index
    %52 = vector.load %arg4[%51, %c0_27, %c0_28] : memref<27x128x128xbf16, #tpu.memory_space<vmem>>, vector<1x128x128xbf16>
    %53 = vector.shape_cast %52 : vector<1x128x128xbf16> to vector<128x128xbf16>
    %cst_29 = arith.constant dense<0.000000e+00> : vector<64x128xf32>
    %54 = tpu.matmul %47, %53, %cst_29 {dimension_numbers = #tpu.dot_dimension_numbers<[1], [0], [0], [1], [0, 0, 1, 1], [], []>} : vector<64x128xbf16>, vector<128x128xbf16>, vector<64x128xf32> -> vector<64x128xf32>
    %55 = arith.addf %45, %54 : vector<64x128xf32>
    %56 = vector.extract_strided_slice %4 {offsets = [1, 2, 0], sizes = [8, 8, 128], strides = [1, 1, 1]} : vector<10x10x128xbf16> to vector<8x8x128xbf16>
    %57 = vector.shape_cast %56 : vector<8x8x128xbf16> to vector<64x128xbf16>
    %c9_i32_30 = arith.constant 9 : i32
    %58 = arith.muli %arg2, %c9_i32_30 : i32
    %c3_i32_31 = arith.constant 3 : i32
    %59 = arith.addi %58, %c3_i32_31 : i32
    %c2_i32_32 = arith.constant 2 : i32
    %60 = arith.addi %59, %c2_i32_32 : i32
    %61 = arith.index_cast %60 : i32 to index
    %c0_33 = arith.constant 0 : index
    %c0_34 = arith.constant 0 : index
    %62 = vector.load %arg4[%61, %c0_33, %c0_34] : memref<27x128x128xbf16, #tpu.memory_space<vmem>>, vector<1x128x128xbf16>
    %63 = vector.shape_cast %62 : vector<1x128x128xbf16> to vector<128x128xbf16>
    %cst_35 = arith.constant dense<0.000000e+00> : vector<64x128xf32>
    %64 = tpu.matmul %57, %63, %cst_35 {dimension_numbers = #tpu.dot_dimension_numbers<[1], [0], [0], [1], [0, 0, 1, 1], [], []>} : vector<64x128xbf16>, vector<128x128xbf16>, vector<64x128xf32> -> vector<64x128xf32>
    %65 = arith.addf %55, %64 : vector<64x128xf32>
    %66 = vector.extract_strided_slice %4 {offsets = [2, 0, 0], sizes = [8, 8, 128], strides = [1, 1, 1]} : vector<10x10x128xbf16> to vector<8x8x128xbf16>
    %67 = vector.shape_cast %66 : vector<8x8x128xbf16> to vector<64x128xbf16>
    %c9_i32_36 = arith.constant 9 : i32
    %68 = arith.muli %arg2, %c9_i32_36 : i32
    %c6_i32 = arith.constant 6 : i32
    %69 = arith.addi %68, %c6_i32 : i32
    %c0_i32_37 = arith.constant 0 : i32
    %70 = arith.addi %69, %c0_i32_37 : i32
    %71 = arith.index_cast %70 : i32 to index
    %c0_38 = arith.constant 0 : index
    %c0_39 = arith.constant 0 : index
    %72 = vector.load %arg4[%71, %c0_38, %c0_39] : memref<27x128x128xbf16, #tpu.memory_space<vmem>>, vector<1x128x128xbf16>
    %73 = vector.shape_cast %72 : vector<1x128x128xbf16> to vector<128x128xbf16>
    %cst_40 = arith.constant dense<0.000000e+00> : vector<64x128xf32>
    %74 = tpu.matmul %67, %73, %cst_40 {dimension_numbers = #tpu.dot_dimension_numbers<[1], [0], [0], [1], [0, 0, 1, 1], [], []>} : vector<64x128xbf16>, vector<128x128xbf16>, vector<64x128xf32> -> vector<64x128xf32>
    %75 = arith.addf %65, %74 : vector<64x128xf32>
    %76 = vector.extract_strided_slice %4 {offsets = [2, 1, 0], sizes = [8, 8, 128], strides = [1, 1, 1]} : vector<10x10x128xbf16> to vector<8x8x128xbf16>
    %77 = vector.shape_cast %76 : vector<8x8x128xbf16> to vector<64x128xbf16>
    %c9_i32_41 = arith.constant 9 : i32
    %78 = arith.muli %arg2, %c9_i32_41 : i32
    %c6_i32_42 = arith.constant 6 : i32
    %79 = arith.addi %78, %c6_i32_42 : i32
    %c1_i32_43 = arith.constant 1 : i32
    %80 = arith.addi %79, %c1_i32_43 : i32
    %81 = arith.index_cast %80 : i32 to index
    %c0_44 = arith.constant 0 : index
    %c0_45 = arith.constant 0 : index
    %82 = vector.load %arg4[%81, %c0_44, %c0_45] : memref<27x128x128xbf16, #tpu.memory_space<vmem>>, vector<1x128x128xbf16>
    %83 = vector.shape_cast %82 : vector<1x128x128xbf16> to vector<128x128xbf16>
    %cst_46 = arith.constant dense<0.000000e+00> : vector<64x128xf32>
    %84 = tpu.matmul %77, %83, %cst_46 {dimension_numbers = #tpu.dot_dimension_numbers<[1], [0], [0], [1], [0, 0, 1, 1], [], []>} : vector<64x128xbf16>, vector<128x128xbf16>, vector<64x128xf32> -> vector<64x128xf32>
    %85 = arith.addf %75, %84 : vector<64x128xf32>
    %86 = vector.extract_strided_slice %4 {offsets = [2, 2, 0], sizes = [8, 8, 128], strides = [1, 1, 1]} : vector<10x10x128xbf16> to vector<8x8x128xbf16>
    %87 = vector.shape_cast %86 : vector<8x8x128xbf16> to vector<64x128xbf16>
    %c9_i32_47 = arith.constant 9 : i32
    %88 = arith.muli %arg2, %c9_i32_47 : i32
    %c6_i32_48 = arith.constant 6 : i32
    %89 = arith.addi %88, %c6_i32_48 : i32
    %c2_i32_49 = arith.constant 2 : i32
    %90 = arith.addi %89, %c2_i32_49 : i32
    %91 = arith.index_cast %90 : i32 to index
    %c0_50 = arith.constant 0 : index
    %c0_51 = arith.constant 0 : index
    %92 = vector.load %arg4[%91, %c0_50, %c0_51] : memref<27x128x128xbf16, #tpu.memory_space<vmem>>, vector<1x128x128xbf16>
    %93 = vector.shape_cast %92 : vector<1x128x128xbf16> to vector<128x128xbf16>
    %cst_52 = arith.constant dense<0.000000e+00> : vector<64x128xf32>
    %94 = tpu.matmul %87, %93, %cst_52 {dimension_numbers = #tpu.dot_dimension_numbers<[1], [0], [0], [1], [0, 0, 1, 1], [], []>} : vector<64x128xbf16>, vector<128x128xbf16>, vector<64x128xf32> -> vector<64x128xf32>
    %95 = arith.addf %85, %94 : vector<64x128xf32>
    %c0_53 = arith.constant 0 : index
    %c0_54 = arith.constant 0 : index
    %96 = vector.load %arg8[%c0_53, %c0_54] : memref<64x128xf32, #tpu.memory_space<vmem>>, vector<64x128xf32>
    %97 = arith.addf %96, %95 : vector<64x128xf32>
    %c0_55 = arith.constant 0 : index
    %c0_56 = arith.constant 0 : index
    %98 = vector.load %arg8[%c0_55, %c0_56] : memref<64x128xf32, #tpu.memory_space<vmem>>, vector<64x128xf32>
    tpu.vector_store %arg8[%c0_55, %c0_56], %97 {strides = array<i32>} : memref<64x128xf32, #tpu.memory_space<vmem>>, vector<64x128xf32>,
    %c2_i32_57 = arith.constant 2 : i32
    %99 = arith.cmpi eq, %arg2, %c2_i32_57 : i32
    %100 = arith.extui %99 : i1 to i32
    %c0_i32_58 = arith.constant 0 : i32
    %101 = arith.cmpi ne, %100, %c0_i32_58 : i32
    scf.if %101 {
      %c0_59 = arith.constant 0 : index
      %c0_60 = arith.constant 0 : index
      %102 = vector.load %arg8[%c0_59, %c0_60] : memref<64x128xf32, #tpu.memory_space<vmem>>, vector<64x128xf32>
      %103 = arith.truncf %102 : vector<64x128xf32> to vector<64x128xbf16>
      %c0_61 = arith.constant 0 : index
      %c0_62 = arith.constant 0 : index
      %c0_63 = arith.constant 0 : index
      %104 = vector.load %arg5[%c0_61, %c0_62, %c0_63] : memref<1x64x128xbf16, #tpu.memory_space<vmem>>, vector<1x64x128xbf16>
      %105 = vector.shape_cast %104 : vector<1x64x128xbf16> to vector<64x128xbf16>
      %106 = vector.shape_cast %103 : vector<64x128xbf16> to vector<1x64x128xbf16>
      tpu.vector_store %arg5[%c0_61, %c0_62, %c0_63], %106 {strides = array<i32>} : memref<1x64x128xbf16, #tpu.memory_space<vmem>>, vector<1x64x128xbf16>,
      %cst_64 = arith.constant dense<0.000000e+00> : vector<128xf32>
      %107 = vector.multi_reduction <add>, %102, %cst_64 [0] : vector<64x128xf32> to vector<128xf32>
      %108 = vector.shape_cast %107 : vector<128xf32> to vector<1x128xf32>
      %c0_65 = arith.constant 0 : index
      %c0_66 = arith.constant 0 : index
      %c0_67 = arith.constant 0 : index
      %109 = vector.load %arg6[%c0_65, %c0_66, %c0_67] : memref<1x1x128xf32, #tpu.memory_space<vmem>>, vector<1x1x128xf32>
      %110 = vector.shape_cast %109 : vector<1x1x128xf32> to vector<1x128xf32>
      %111 = vector.shape_cast %108 : vector<1x128xf32> to vector<1x1x128xf32>
      tpu.vector_store %arg6[%c0_65, %c0_66, %c0_67], %111 {strides = array<i32>} : memref<1x1x128xf32, #tpu.memory_space<vmem>>, vector<1x1x128xf32>,
      %112 = arith.mulf %102, %102 : vector<64x128xf32>
      %cst_68 = arith.constant dense<0.000000e+00> : vector<128xf32>
      %113 = vector.multi_reduction <add>, %112, %cst_68 [0] : vector<64x128xf32> to vector<128xf32>
      %114 = vector.shape_cast %113 : vector<128xf32> to vector<1x128xf32>
      %c0_69 = arith.constant 0 : index
      %c0_70 = arith.constant 0 : index
      %c0_71 = arith.constant 0 : index
      %115 = vector.load %arg7[%c0_69, %c0_70, %c0_71] : memref<1x1x128xf32, #tpu.memory_space<vmem>>, vector<1x1x128xf32>
      %116 = vector.shape_cast %115 : vector<1x1x128xf32> to vector<1x128xf32>
      %117 = vector.shape_cast %114 : vector<1x128xf32> to vector<1x1x128xf32>
      tpu.vector_store %arg7[%c0_69, %c0_70, %c0_71], %117 {strides = array<i32>} : memref<1x1x128xf32, #tpu.memory_space<vmem>>, vector<1x1x128xf32>,
    } else {
    }
    return
  }
  func.func @transform_0(%arg0: i32, %arg1: i32, %arg2: i32) -> (i32, i32, i32, i32) {
    %c6_i32 = arith.constant 6 : i32
    %0 = arith.muli %arg0, %c6_i32 : i32
    %1 = arith.addi %0, %arg1 : i32
    %c1_i32 = arith.constant 1 : i32
    %2 = arith.muli %arg2, %c1_i32 : i32
    %3 = arith.addi %1, %2 : i32
    %c0_i32 = arith.constant 0 : i32
    %c0_i32_0 = arith.constant 0 : i32
    %c0_i32_1 = arith.constant 0 : i32
    %c0_i32_2 = arith.constant 0 : i32
    return %3, %c0_i32, %c0_i32_0, %c0_i32_1 : i32, i32, i32, i32
  }
  func.func @transform_1(%arg0: i32, %arg1: i32, %arg2: i32) -> (i32, i32, i32) {
    %c0_i32 = arith.constant 0 : i32
    %c0_i32_0 = arith.constant 0 : i32
    %c0_i32_1 = arith.constant 0 : i32
    %c0_i32_2 = arith.constant 0 : i32
    return %c0_i32, %c0_i32_0, %c0_i32_1 : i32, i32, i32
  }
  func.func @transform_2(%arg0: i32, %arg1: i32, %arg2: i32) -> (i32, i32, i32) {
    %c4_i32 = arith.constant 4 : i32
    %0 = arith.muli %arg0, %c4_i32 : i32
    %1 = arith.addi %0, %arg1 : i32
    %c0_i32 = arith.constant 0 : i32
    %c0_i32_0 = arith.constant 0 : i32
    %c0_i32_1 = arith.constant 0 : i32
    return %1, %c0_i32, %c0_i32_0 : i32, i32, i32
  }
  func.func @transform_3(%arg0: i32, %arg1: i32, %arg2: i32) -> (i32, i32, i32) {
    %c4_i32 = arith.constant 4 : i32
    %0 = arith.muli %arg0, %c4_i32 : i32
    %1 = arith.addi %0, %arg1 : i32
    %c0_i32 = arith.constant 0 : i32
    %c0_i32_0 = arith.constant 0 : i32
    %c0_i32_1 = arith.constant 0 : i32
    return %1, %c0_i32, %c0_i32_0 : i32, i32, i32
  }
  func.func @transform_4(%arg0: i32, %arg1: i32, %arg2: i32) -> (i32, i32, i32) {
    %c4_i32 = arith.constant 4 : i32
    %0 = arith.muli %arg0, %c4_i32 : i32
    %1 = arith.addi %0, %arg1 : i32
    %c0_i32 = arith.constant 0 : i32
    %c0_i32_0 = arith.constant 0 : i32
    %c0_i32_1 = arith.constant 0 : i32
    return %1, %c0_i32, %c0_i32_0 : i32, i32, i32
  }
}

module attributes {stable_mosaic.version = 11 : i64} {
  func.func @_bn_act_pad_kernel(%arg0: i32, %arg1: i32, %arg2: memref<1x64x128xbf16, #tpu.memory_space<vmem>>, %arg3: memref<1x128xf32, #tpu.memory_space<vmem>>, %arg4: memref<1x128xf32, #tpu.memory_space<vmem>>, %arg5: memref<1x10x10x128xbf16, #tpu.memory_space<vmem>>) attributes {dimension_semantics = [#tpu.dimension_semantics<parallel>, #tpu.dimension_semantics<parallel>], iteration_bounds = array<i64: 2, 6>, scalar_prefetch = 0 : i64, scratch_operands = 0 : i64, tpu.core_type = #tpu.core_type<tc>, window_params = [{transform_indices = @transform_0, window_bounds = array<i64: 1, 64, 128>}, {pipeline_mode = #tpu.pipeline_mode<synchronous>, transform_indices = @transform_1, window_bounds = array<i64: 1, 128>}, {pipeline_mode = #tpu.pipeline_mode<synchronous>, transform_indices = @transform_2, window_bounds = array<i64: 1, 128>}, {transform_indices = @transform_3, window_bounds = array<i64: 1, 10, 10, 128>}]} {
    %cst = arith.constant 0.000000e+00 : bf16
    %0 = vector.broadcast %cst : bf16 to vector<1x10x10x128xbf16>
    %c0 = arith.constant 0 : index
    %c0_0 = arith.constant 0 : index
    %c0_1 = arith.constant 0 : index
    %c0_2 = arith.constant 0 : index
    %1 = vector.load %arg5[%c0, %c0_0, %c0_1, %c0_2] : memref<1x10x10x128xbf16, #tpu.memory_space<vmem>>, vector<1x10x10x128xbf16>
    tpu.vector_store %arg5[%c0, %c0_0, %c0_1, %c0_2], %0 {strides = array<i32>} : memref<1x10x10x128xbf16, #tpu.memory_space<vmem>>, vector<1x10x10x128xbf16>,
    %c1_i32 = arith.constant 1 : i32
    %2 = arith.cmpi sge, %arg1, %c1_i32 : i32
    %c5_i32 = arith.constant 5 : i32
    %3 = arith.cmpi slt, %arg1, %c5_i32 : i32
    %4 = arith.andi %2, %3 : i1
    %5 = arith.extui %4 : i1 to i32
    %c0_i32 = arith.constant 0 : i32
    %6 = arith.cmpi ne, %5, %c0_i32 : i32
    scf.if %6 {
      %c0_3 = arith.constant 0 : index
      %c0_4 = arith.constant 0 : index
      %c0_5 = arith.constant 0 : index
      %7 = vector.load %arg2[%c0_3, %c0_4, %c0_5] : memref<1x64x128xbf16, #tpu.memory_space<vmem>>, vector<1x64x128xbf16>
      %8 = vector.shape_cast %7 : vector<1x64x128xbf16> to vector<64x128xbf16>
      %9 = arith.extf %8 : vector<64x128xbf16> to vector<64x128xf32>
      %c0_6 = arith.constant 0 : index
      %c0_7 = arith.constant 0 : index
      %10 = vector.load %arg3[%c0_6, %c0_7] : memref<1x128xf32, #tpu.memory_space<vmem>>, vector<1x128xf32>
      %11 = vector.broadcast %10 : vector<1x128xf32> to vector<64x128xf32>
      %12 = arith.mulf %9, %11 : vector<64x128xf32>
      %c0_8 = arith.constant 0 : index
      %c0_9 = arith.constant 0 : index
      %13 = vector.load %arg4[%c0_8, %c0_9] : memref<1x128xf32, #tpu.memory_space<vmem>>, vector<1x128xf32>
      %14 = vector.broadcast %13 : vector<1x128xf32> to vector<64x128xf32>
      %15 = arith.addf %12, %14 : vector<64x128xf32>
      %cst_10 = arith.constant 0.000000e+00 : f32
      %16 = vector.broadcast %cst_10 : f32 to vector<64x128xf32>
      %17 = arith.maximumf %15, %16 : vector<64x128xf32>
      %18 = vector.shape_cast %17 : vector<64x128xf32> to vector<1x8x8x128xf32>
      %19 = arith.truncf %18 : vector<1x8x8x128xf32> to vector<1x8x8x128xbf16>
      %c0_11 = arith.constant 0 : index
      %c1 = arith.constant 1 : index
      %c1_12 = arith.constant 1 : index
      %c0_13 = arith.constant 0 : index
      %20 = vector.load %arg5[%c0_11, %c1, %c1_12, %c0_13] : memref<1x10x10x128xbf16, #tpu.memory_space<vmem>>, vector<1x8x8x128xbf16>
      tpu.vector_store %arg5[%c0_11, %c1, %c1_12, %c0_13], %19 {strides = array<i32>} : memref<1x10x10x128xbf16, #tpu.memory_space<vmem>>, vector<1x8x8x128xbf16>,
    } else {
    }
    return
  }
  func.func @transform_0(%arg0: i32, %arg1: i32) -> (i32, i32, i32) {
    %c4_i32 = arith.constant 4 : i32
    %0 = arith.muli %arg0, %c4_i32 : i32
    %c1_i32 = arith.constant 1 : i32
    %1 = arith.subi %arg1, %c1_i32 : i32
    %c0_i32 = arith.constant 0 : i32
    %c3_i32 = arith.constant 3 : i32
    %2 = arith.maxsi %c0_i32, %1 : i32
    %3 = arith.minsi %c3_i32, %2 : i32
    %4 = arith.addi %0, %3 : i32
    %c0_i32_0 = arith.constant 0 : i32
    %c0_i32_1 = arith.constant 0 : i32
    %c0_i32_2 = arith.constant 0 : i32
    return %4, %c0_i32_0, %c0_i32_1 : i32, i32, i32
  }
  func.func @transform_1(%arg0: i32, %arg1: i32) -> (i32, i32) {
    %c0_i32 = arith.constant 0 : i32
    %c0_i32_0 = arith.constant 0 : i32
    %c0_i32_1 = arith.constant 0 : i32
    return %c0_i32, %c0_i32_0 : i32, i32
  }
  func.func @transform_2(%arg0: i32, %arg1: i32) -> (i32, i32) {
    %c0_i32 = arith.constant 0 : i32
    %c0_i32_0 = arith.constant 0 : i32
    %c0_i32_1 = arith.constant 0 : i32
    return %c0_i32, %c0_i32_0 : i32, i32
  }
  func.func @transform_3(%arg0: i32, %arg1: i32) -> (i32, i32, i32, i32) {
    %c6_i32 = arith.constant 6 : i32
    %0 = arith.muli %arg0, %c6_i32 : i32
    %1 = arith.addi %0, %arg1 : i32
    %c0_i32 = arith.constant 0 : i32
    %c0_i32_0 = arith.constant 0 : i32
    %c0_i32_1 = arith.constant 0 : i32
    %c0_i32_2 = arith.constant 0 : i32
    return %1, %c0_i32, %c0_i32_0, %c0_i32_1 : i32, i32, i32, i32
  }
}

module attributes {stable_mosaic.version = 11 : i64} {
  func.func @_bn_res_act_kernel(%arg0: i32, %arg1: memref<512x128xbf16, #tpu.memory_space<vmem>>, %arg2: memref<512x128xf32, #tpu.memory_space<vmem>>, %arg3: memref<1x128xf32, #tpu.memory_space<vmem>>, %arg4: memref<1x128xf32, #tpu.memory_space<vmem>>, %arg5: memref<512x128xf32, #tpu.memory_space<vmem>>) attributes {dimension_semantics = [#tpu.dimension_semantics<parallel>], iteration_bounds = array<i64: 1>, scalar_prefetch = 0 : i64, scratch_operands = 0 : i64, tpu.core_type = #tpu.core_type<tc>, window_params = [{transform_indices = @transform_0, window_bounds = array<i64: 512, 128>}, {transform_indices = @transform_1, window_bounds = array<i64: 512, 128>}, {pipeline_mode = #tpu.pipeline_mode<synchronous>, transform_indices = @transform_2, window_bounds = array<i64: 1, 128>}, {pipeline_mode = #tpu.pipeline_mode<synchronous>, transform_indices = @transform_3, window_bounds = array<i64: 1, 128>}, {transform_indices = @transform_4, window_bounds = array<i64: 512, 128>}]} {
    %c0 = arith.constant 0 : index
    %c0_0 = arith.constant 0 : index
    %0 = vector.load %arg1[%c0, %c0_0] : memref<512x128xbf16, #tpu.memory_space<vmem>>, vector<512x128xbf16>
    %1 = arith.extf %0 : vector<512x128xbf16> to vector<512x128xf32>
    %c0_1 = arith.constant 0 : index
    %c0_2 = arith.constant 0 : index
    %2 = vector.load %arg2[%c0_1, %c0_2] : memref<512x128xf32, #tpu.memory_space<vmem>>, vector<512x128xf32>
    %c0_3 = arith.constant 0 : index
    %c0_4 = arith.constant 0 : index
    %3 = vector.load %arg3[%c0_3, %c0_4] : memref<1x128xf32, #tpu.memory_space<vmem>>, vector<1x128xf32>
    %4 = vector.broadcast %3 : vector<1x128xf32> to vector<512x128xf32>
    %5 = arith.mulf %1, %4 : vector<512x128xf32>
    %c0_5 = arith.constant 0 : index
    %c0_6 = arith.constant 0 : index
    %6 = vector.load %arg4[%c0_5, %c0_6] : memref<1x128xf32, #tpu.memory_space<vmem>>, vector<1x128xf32>
    %7 = vector.broadcast %6 : vector<1x128xf32> to vector<512x128xf32>
    %8 = arith.addf %5, %7 : vector<512x128xf32>
    %9 = arith.addf %8, %2 : vector<512x128xf32>
    %cst = arith.constant 0.000000e+00 : f32
    %10 = vector.broadcast %cst : f32 to vector<512x128xf32>
    %11 = arith.maximumf %9, %10 : vector<512x128xf32>
    %c0_7 = arith.constant 0 : index
    %c0_8 = arith.constant 0 : index
    %12 = vector.load %arg5[%c0_7, %c0_8] : memref<512x128xf32, #tpu.memory_space<vmem>>, vector<512x128xf32>
    tpu.vector_store %arg5[%c0_7, %c0_8], %11 {strides = array<i32>} : memref<512x128xf32, #tpu.memory_space<vmem>>, vector<512x128xf32>,
    return
  }
  func.func @transform_0(%arg0: i32) -> (i32, i32) {
    %c0_i32 = arith.constant 0 : i32
    %c0_i32_0 = arith.constant 0 : i32
    return %arg0, %c0_i32 : i32, i32
  }
  func.func @transform_1(%arg0: i32) -> (i32, i32) {
    %c0_i32 = arith.constant 0 : i32
    %c0_i32_0 = arith.constant 0 : i32
    return %arg0, %c0_i32 : i32, i32
  }
  func.func @transform_2(%arg0: i32) -> (i32, i32) {
    %c0_i32 = arith.constant 0 : i32
    %c0_i32_0 = arith.constant 0 : i32
    %c0_i32_1 = arith.constant 0 : i32
    return %c0_i32, %c0_i32_0 : i32, i32
  }
  func.func @transform_3(%arg0: i32) -> (i32, i32) {
    %c0_i32 = arith.constant 0 : i32
    %c0_i32_0 = arith.constant 0 : i32
    %c0_i32_1 = arith.constant 0 : i32
    return %c0_i32, %c0_i32_0 : i32, i32
  }
  func.func @transform_4(%arg0: i32) -> (i32, i32) {
    %c0_i32 = arith.constant 0 : i32
    %c0_i32_0 = arith.constant 0 : i32
    return %arg0, %c0_i32 : i32, i32
  }
}

</mosaic_0001>

<bundles_post_ra>
// kernel: basic_block_forward.5
= control target key start
LH: loop header
LB: loop body
LE: loop exit
PB: predicated region body
PF: predicated region fallthrough
CT: control target
= control target key end

     0   :  { %s773_s12 = smov 0   ;;  %s775_s13 = smov 0   ;;  %s940_s0 = inlined_call_operand.vmem [shape: bf16[8,64,128], index: 0, kind: input, shape index: {}]   ;;  %s941_s1 = inlined_call_operand.vmem [shape: f32[1,128], index: 1, kind: input, shape index: {}]   ;;  %s942_s2 = inlined_call_operand.vmem [shape: f32[1,128], index: 2, kind: input, shape index: {}]   ;;  %s943_s3 = inlined_call_operand.vmem [shape: bf16[12,10,10,128], index: 3, kind: output, shape index: {}]  }
   0x1   :  { %s777_s14 = smov 0   ;;  %s779_s15 = smov 0  }
   0x2   :  { %s781_s16 = smov 0  }
   0x3 LB: > { %s22_s17 = sadd.s32 1, %s742_s14  ;;  %s25_s18 = sadd.s32 1, %s746_s15  ;;  %s750_s16 = sphi %s781_s16, %s13_s16   ;;  %s746_s15 = sphi %s779_s15, %s952_s15   ;;  %s742_s14 = sphi %s777_s14, %s951_s14   ;;  %s738_s13 = sphi %s775_s13, %s950_s13   ;;  %s734_s12 = sphi %s773_s12, %s949_s12  }
   0x4   : > { %p23_p0 = scmp.ge.s32.totalorder %s22_s17, 6  ;;  %p581_p1 = scmp.ge.s32.totalorder %s750_s16, 1 }
   0x5   : > { %p181_p2 = scmp.lt.s32.totalorder %s750_s16, 13 }
   0x6   : > { %s954_s17 = smov (%p23_p0, %s22_s17), 0  ;;  %s956_s18 = smov (!%p23_p0, %s25_s18), %s746_s15 }
   0x7   : > { %p182_p3 = pnand %p581_p1, %p181_p2  ;;  %p27_p4 = scmp.ge.s32.totalorder %s956_s18, 2 }
   0x8   : > { %s582_s19 = sshll.u32 (!%p182_p3), %s738_s13, 2  ;;  %s583_s20 = sadd.s32 (!%p182_p3), 4294967295, %s734_s12 }
   0x9   : > { %s958_s18 = smov (%p27_p4, %s956_s18), 0  ;;  %185 = sbr.rel (%p182_p3) target bundleno = 59 (0x3b), region = 32 }
   0xa   : > { %p216_p5 = scmp.gt.s32.totalorder (!%p182_p3), %s583_s20, 0  ;;  %p584_p6 = scmp.lt.s32.totalorder (!%p182_p3), %s583_s20, 3 }
   0xb   : > { %s233_s21 = smul.u32 (!%p182_p3), 6, %s738_s13  ;;  %p263_p7 = scmp.ge.s32.totalorder (!%p182_p3), %s734_s12, 1 }
   0xc   : > { %p264_p8 = scmp.lt.s32.totalorder (!%p182_p3), %s734_s12, 5 }
   0xd   : > { %s234_s22 = sadd.s32 (!%p182_p3), %s734_s12, %s233_s21 }
   0xe   : > { %s960_s20 = smov (!%p216_p5, %s583_s20), 0  ;;  %p235_p9 = scmp.lt.s32.totalorder %s234_s22, 11  ;;  %v752_v0 = vmov 0  }
   0xf   : > { %s962_s20 = smov (!%p584_p6, %s960_s20), 3  ;;  %p803_p10 = pnand %p264_p8, %p263_p7 }
  0x10   : > { %s220_s24 = sadd.s32 %s962_s20, %s582_s19  ;;  %s964_s22 = smov (!%p235_p9, %s234_s22), 11 }
  0x11   : > { %p221_p11 = scmp.lt.s32.totalorder %s220_s24, 7  ;;  %s670_s25 = smul.u32 80, %s964_s22 }
  0x13   : > { %s966_s24 = smov (!%p221_p11, %s220_s24), 7  ;;  %s815_s5 = scalar_lea.vmem %s943_s3, %s670_s25 }
  0x14   : > { %s642_s26 = sshll.u32 %s966_s24, 5  ;;  %243 = vst [vmem:[%s815_s5] sm:$0xf] %v752_v0  ;;  %244 = vst [vmem:[%s815_s5 + $0x4] sm:$0x1] %v752_v0 }
  0x15   : > { %s810_s29 = scalar_lea.vmem %s940_s0, %s642_s26  ;;  %245 = vst [vmem:[%s815_s5 + $0x8] sm:$0xf] %v752_v0  ;;  %246 = vst [vmem:[%s815_s5 + $0xc] sm:$0x1] %v752_v0 }
  0x16   : > { %247 = vst [vmem:[%s815_s5 + $0x10] sm:$0xf] %v752_v0  ;;  %248 = vst [vmem:[%s815_s5 + $0x14] sm:$0x1] %v752_v0 }
  0x17   : > { %249 = vst [vmem:[%s815_s5 + $0x18] sm:$0xf] %v752_v0  ;;  %250 = vst [vmem:[%s815_s5 + $0x1c] sm:$0x1] %v752_v0 }
  0x18   : > { %251 = vst [vmem:[%s815_s5 + $0x20] sm:$0xf] %v752_v0  ;;  %252 = vst [vmem:[%s815_s5 + $0x24] sm:$0x1] %v752_v0 }
  0x19   : > { %253 = vst [vmem:[%s815_s5 + $0x28] sm:$0xf] %v752_v0  ;;  %254 = vst [vmem:[%s815_s5 + $0x2c] sm:$0x1] %v752_v0  ;;  %268 = sbr.rel (%p803_p10) target bundleno = 59 (0x3b), region = 36 }
  0x1a   : > { %255 = vst [vmem:[%s815_s5 + $0x30] sm:$0xf] %v752_v0  ;;  %256 = vst [vmem:[%s815_s5 + $0x34] sm:$0x1] %v752_v0 }
  0x1b   : > { %257 = vst [vmem:[%s815_s5 + $0x38] sm:$0xf] %v752_v0  ;;  %258 = vst [vmem:[%s815_s5 + $0x3c] sm:$0x1] %v752_v0 }
  0x1c   : > { %259 = vst [vmem:[%s815_s5 + $0x40] sm:$0xf] %v752_v0  ;;  %260 = vst [vmem:[%s815_s5 + $0x44] sm:$0x1] %v752_v0 }
  0x1d   : > { %261 = vst [vmem:[%s815_s5 + $0x48] sm:$0xf] %v752_v0  ;;  %262 = vst [vmem:[%s815_s5 + $0x4c] sm:$0x1] %v752_v0 }
  0x1e   : > { %v652_v1 = vld [vmem:[%s810_s29] sm:$0xff]   ;;  %v667_v5 = vld [vmem:[%s810_s29 + $0x8] sm:$0xff]   ;;  %vm436_vm0 = vcmask 1043456   ;;  %vm437_vm1 = vsmask.f32 7938  ;;  %vm442_vm2 = vcmask 1040384  }
  0x1f   : > { %v592_v2 = vld [vmem:[%s941_s1] ss:$0 sm:$0xff]  ;;  %v653_v3 = vunpack.c.l.bf16 %v652_v1  ;;  %v654_v4 = vunpack.c.h.bf16 %v652_v1  ;;  %v657_v7 = vunpack.c.l.bf16 %v667_v5  ;;  %v658_v8 = vunpack.c.h.bf16 %v667_v5  ;;  %v668_v15 = vld [vmem:[%s810_s29 + $0x10] sm:$0xff]   ;;  %v669_v20 = vld [vmem:[%s810_s29 + $0x18] sm:$0xff]  }
  0x20   : > { %v593_v6 = vld [vmem:[%s942_s2] ss:$0 sm:$0xff]  ;;  %vm443_vm3 = vsmask.f32 256  ;;  %v661_v18 = vunpack.c.l.bf16 %v668_v15  ;;  %v662_v19 = vunpack.c.h.bf16 %v668_v15  ;;  %v665_v23 = vunpack.c.l.bf16 %v669_v20  ;;  %v602_v41 = vld [vmem:[%s815_s5 + $0x8] sm:$0xf]  ;;  %vm854_vm4 = vmand %vm436_vm0, %vm437_vm1 }
  0x21   : > { %v292_v9 = vmul.f32 %v653_v3, %v592_v2  ;;  %v293_v10 = vmul.f32 %v654_v4, %v592_v2  ;;  %v294_v11 = vmul.f32 %v657_v7, %v592_v2  ;;  %v295_v12 = vmul.f32 %v658_v8, %v592_v2  ;;  %v604_v42 = vld [vmem:[%s815_s5 + $0xc] sm:$0x1]  ;;  %v606_v43 = vld [vmem:[%s815_s5 + $0x10] sm:$0xf]  ;;  %v608_v51 = vld [vmem:[%s815_s5 + $0x14] sm:$0x1] }
  0x22   : > { %v666_v24 = vunpack.c.h.bf16 %v669_v20  ;;  %v296_v27 = vmul.f32 %v661_v18, %v592_v2  ;;  %v297_v28 = vmul.f32 %v662_v19, %v592_v2  ;;  %v298_v31 = vmul.f32 %v665_v23, %v592_v2  ;;  %vm861_vm5 = vmand %vm442_vm2, %vm443_vm3  ;;  %v610_v56 = vld [vmem:[%s815_s5 + $0x18] sm:$0xf]  ;;  %v612_v57 = vld [vmem:[%s815_s5 + $0x1c] sm:$0x1] }
  0x23   : > { %v307_v13 = vadd.f32 %v593_v6, %v292_v9  ;;  %v308_v14 = vadd.f32 %v593_v6, %v293_v10  ;;  %v309_v16 = vadd.f32 %v593_v6, %v294_v11  ;;  %v310_v17 = vadd.f32 %v593_v6, %v295_v12  ;;  %v614_v1 = vld [vmem:[%s815_s5 + $0x20] sm:$0xf]  ;;  %v618_v23 = vld [vmem:[%s815_s5 + $0x28] sm:$0xf] }
  0x24   : > { %v299_v32 = vmul.f32 %v666_v24, %v592_v2  ;;  %v311_v35 = vadd.f32 %v593_v6, %v296_v27  ;;  %v312_v36 = vadd.f32 %v593_v6, %v297_v28  ;;  %v313_v59 = vadd.f32 %v593_v6, %v298_v31  ;;  %v616_v2 = vld [vmem:[%s815_s5 + $0x24] sm:$0x1]  ;;  %v620_v27 = vld [vmem:[%s815_s5 + $0x2c] sm:$0x1] }
  0x25   : > { %v315_v21 = vmax.f32 %v307_v13, 0.0  ;;  %v316_v22 = vmax.f32 %v308_v14, 0.0  ;;  %v317_v25 = vmax.f32 %v309_v16, 0.0  ;;  %v318_v26 = vmax.f32 %v310_v17, 0.0 }
  0x26   : > { %v319_v52 = vmax.f32 %v311_v35, 0.0  ;;  %v320_v53 = vmax.f32 %v312_v36, 0.0  ;;  %v314_v60 = vadd.f32 %v593_v6, %v299_v32  ;;  %v321_v17 = vmax.f32 %v313_v59, 0.0 }
  0x27   : > { %v643_v29 = vpack.c.bf16 %v315_v21, %v315_v21  ;;  %v644_v30 = vpack.c.bf16 %v316_v22, %v316_v22  ;;  %v645_v33 = vpack.c.bf16 %v317_v25, %v317_v25  ;;  %v646_v34 = vpack.c.bf16 %v318_v26, %v318_v26 }
  0x28   : > { %v647_v15 = vpack.c.bf16 %v319_v52, %v319_v52  ;;  %v648_v16 = vpack.c.bf16 %v320_v53, %v320_v53  ;;  %v322_v18 = vmax.f32 %v314_v60, 0.0  ;;  %v649_v24 = vpack.c.bf16 %v321_v17, %v321_v17 }
  0x29   : > { %v356_v37 = vshrl.u32 %v643_v29, 16  ;;  %v359_v38 = vshll.u32 %v643_v29, 16  ;;  %v364_v39 = vshrl.u32 %v644_v30, 16  ;;  %v367_v40 = vshll.u32 %v644_v30, 16  ;;  %v622_v29 = vld [vmem:[%s815_s5 + $0x30] sm:$0xf] }
  0x2a   : > { %v372_v44 = vshrl.u32 %v645_v33, 16  ;;  %v375_v45 = vshll.u32 %v645_v33, 16  ;;  %v380_v46 = vshrl.u32 %v646_v34, 16  ;;  %v383_v47 = vshll.u32 %v646_v34, 16  ;;  %v624_v30 = vld [vmem:[%s815_s5 + $0x34] sm:$0x1] }
  0x2b   : > { %v358_v48 = vrot.slane %v356_v37, 7  ;;  %v366_v50 = vrot.slane %v364_v39, 7  ;;  %v388_v19 = vshrl.u32 %v647_v15, 16  ;;  %v391_v20 = vshll.u32 %v647_v15, 16 }
  0x2c   : > { %v374_v55 = vrot.slane %v372_v44, 7  ;;  %v382_v58 = vrot.slane %v380_v46, 7  ;;  %v396_v21 = vshrl.u32 %v648_v16, 16  ;;  %v399_v22 = vshll.u32 %v648_v16, 16  ;;  %v628_v46 = vld [vmem:[%s815_s5 + $0x3c] sm:$0x1] }
  0x2d   : > { %v361_v61 = vor.u32 %v359_v38, %v358_v48  ;;  %v362_v62 = vrot.slane %v358_v48, 4  ;;  %v369_v63 = vor.u32 %v367_v40, %v366_v50  ;;  %v370_v0 = vrot.slane %v366_v50, 4  ;;  %v626_v40 = vld [vmem:[%s815_s5 + $0x38] sm:$0xf]  ;;  %v632_v48 = vld [vmem:[%s815_s5 + $0x44] sm:$0x1] }
  0x2e   : > { %v377_v3 = vor.u32 %v375_v45, %v374_v55  ;;  %v378_v4 = vrot.slane %v374_v55, 4  ;;  %v385_v5 = vor.u32 %v383_v47, %v382_v58  ;;  %v386_v7 = vrot.slane %v382_v58, 4  ;;  %v630_v47 = vld [vmem:[%s815_s5 + $0x40] sm:$0xf] }
  0x2f   : > { %v440_v6 = vsel %vm854_vm4, %v361_v61, %v602_v41  ;;  %v446_v8 = vsel %vm861_vm5, %v362_v62, %v604_v42  ;;  %v449_v9 = vsel %vm854_vm4, %v369_v63, %v606_v43  ;;  %v452_v10 = vsel %vm861_vm5, %v370_v0, %v608_v51 }
  0x30   : > { %603 = vst [vmem:[%s815_s5 + $0x8] sm:$0xf] %v440_v6  ;;  %605 = vst [vmem:[%s815_s5 + $0xc] sm:$0x1] %v446_v8  ;;  %v455_v11 = vsel %vm854_vm4, %v377_v3, %v610_v56  ;;  %v458_v12 = vsel %vm861_vm5, %v378_v4, %v612_v57  ;;  %v461_v13 = vsel %vm854_vm4, %v385_v5, %v614_v1  ;;  %v390_v26 = vrot.slane %v388_v19, 7 }
  0x31   : > { %607 = vst [vmem:[%s815_s5 + $0x10] sm:$0xf] %v449_v9  ;;  %609 = vst [vmem:[%s815_s5 + $0x14] sm:$0x1] %v452_v10  ;;  %v464_v14 = vsel %vm861_vm5, %v386_v7, %v616_v2  ;;  %v650_v25 = vpack.c.bf16 %v322_v18, %v322_v18  ;;  %v398_v28 = vrot.slane %v396_v21, 7  ;;  %v404_v31 = vshrl.u32 %v649_v24, 16 }
  0x32   : > { %611 = vst [vmem:[%s815_s5 + $0x18] sm:$0xf] %v455_v11  ;;  %613 = vst [vmem:[%s815_s5 + $0x1c] sm:$0x1] %v458_v12  ;;  %v407_v32 = vshll.u32 %v649_v24, 16  ;;  %v393_v35 = vor.u32 %v391_v20, %v390_v26  ;;  %v394_v36 = vrot.slane %v390_v26, 4 }
  0x33   : > { %615 = vst [vmem:[%s815_s5 + $0x20] sm:$0xf] %v461_v13  ;;  %617 = vst [vmem:[%s815_s5 + $0x24] sm:$0x1] %v464_v14  ;;  %v412_v33 = vshrl.u32 %v650_v25, 16  ;;  %v415_v34 = vshll.u32 %v650_v25, 16  ;;  %v401_v37 = vor.u32 %v399_v22, %v398_v28 }
  0x34   : > { %v402_v38 = vrot.slane %v398_v28, 4  ;;  %v406_v39 = vrot.slane %v404_v31, 7  ;;  %v467_v42 = vsel %vm854_vm4, %v393_v35, %v618_v23  ;;  %v470_v43 = vsel %vm861_vm5, %v394_v36, %v620_v27 }
  0x35   : > { %v414_v41 = vrot.slane %v412_v33, 7  ;;  %v473_v44 = vsel %vm854_vm4, %v401_v37, %v622_v29  ;;  %619 = vst [vmem:[%s815_s5 + $0x28] sm:$0xf] %v467_v42  ;;  %621 = vst [vmem:[%s815_s5 + $0x2c] sm:$0x1] %v470_v43 }
  0x36   : > { %v476_v45 = vsel %vm861_vm5, %v402_v38, %v624_v30  ;;  %623 = vst [vmem:[%s815_s5 + $0x30] sm:$0xf] %v473_v44  ;;  %v409_v50 = vor.u32 %v407_v32, %v406_v39  ;;  %v410_v51 = vrot.slane %v406_v39, 4 }
  0x37   : > { %625 = vst [vmem:[%s815_s5 + $0x34] sm:$0x1] %v476_v45  ;;  %v417_v52 = vor.u32 %v415_v34, %v414_v41  ;;  %v418_v53 = vrot.slane %v414_v41, 4 }
  0x38   : > { %v479_v55 = vsel %vm854_vm4, %v409_v50, %v626_v40  ;;  %v482_v56 = vsel %vm861_vm5, %v410_v51, %v628_v46 }
  0x39   : > { %v485_v57 = vsel %vm854_vm4, %v417_v52, %v630_v47  ;;  %v488_v58 = vsel %vm861_vm5, %v418_v53, %v632_v48  ;;  %627 = vst [vmem:[%s815_s5 + $0x38] sm:$0xf] %v479_v55  ;;  %629 = vst [vmem:[%s815_s5 + $0x3c] sm:$0x1] %v482_v56 }
  0x3a   : > { %631 = vst [vmem:[%s815_s5 + $0x40] sm:$0xf] %v485_v57  ;;  %633 = vst [vmem:[%s815_s5 + $0x44] sm:$0x1] %v488_v58 }
  0x3b PF: > { %s13_s16 = sadd.s32 1, %s750_s16   ;;  %s949_s12 = smov %s742_s14 }
  0x3c   : > { %p10_p12 = scmp.ge.s32.totalorder %s13_s16, 14   ;;  %s950_s13 = smov %s746_s15 }
  0x3d   : > { %s951_s14 = smov %s954_s17  ;;  %s952_s15 = smov %s958_s18 }
  0x3e   :  { %12 = sbr.rel (!%p10_p12) target bundleno = 3 (0x3), region = 67 }

// kernel: basic_block_forward.4
= control target key start
LH: loop header
LB: loop body
LE: loop exit
PB: predicated region body
PF: predicated region fallthrough
CT: control target
= control target key end

     0   :  { %s3018_s15 = smov 0   ;;  %s3020_s16 = smov 0   ;;  %s3489_s0 = inlined_call_operand.vmem [shape: bf16[12,10,10,128], index: 0, kind: input, shape index: {}]   ;;  %s3490_s1 = inlined_call_operand.vmem [shape: bf16[27,128,128], index: 1, kind: input, shape index: {}]   ;;  %s3491_s2 = inlined_call_operand.vmem [shape: bf16[8,64,128], index: 2, kind: output, shape index: {0}]   ;;  %s3492_s3 = inlined_call_operand.vmem [shape: f32[8,1,128], index: 3, kind: output, shape index: {1}]   ;;  %s3493_s4 = inlined_call_operand.vmem [shape: f32[8,1,128], index: 4, kind: output, shape index: {2}]  }
   0x1   :  { %s3022_s17 = smov 0   ;;  %s3024_s18 = smov 0  }
   0x2   :  { %s3026_s19 = smov 0   ;;  %s3028_s20 = smov 0  }
   0x3   :  { %s3030_s21 = smov 0  }
   0x4 LB: > { %s27_s22 = sadd.s32 1, %s2978_s18  ;;  %s30_s23 = sadd.s32 1, %s2982_s19  ;;  %s2990_s21 = sphi %s3030_s21, %s15_s21   ;;  %s2986_s20 = sphi %s3028_s20, %s3511_s20   ;;  %s2982_s19 = sphi %s3026_s19, %s3510_s19   ;;  %s2978_s18 = sphi %s3024_s18, %s3509_s18   ;;  %s2974_s17 = sphi %s3022_s17, %s3508_s17   ;;  %s2970_s16 = sphi %s3020_s16, %s3507_s16   ;;  %s2966_s15 = sphi %s3018_s15, %s3506_s15  }
   0x5   : > { %p28_p0 = scmp.ge.s32.totalorder %s27_s22, 3  ;;  %p2158_p1 = scmp.ge.s32.totalorder %s2990_s21, 1 }
   0x6   : > { %p210_p2 = scmp.lt.s32.totalorder %s2990_s21, 25  ;;  %s34_s24 = sadd.s32 1, %s2986_s20 }
   0x7   : > { %s3513_s22 = smov (%p28_p0, %s27_s22), 0  ;;  %s3515_s23 = smov (!%p28_p0, %s30_s23), %s2982_s19 }
   0x8   : > { %p211_p3 = pnand %p2158_p1, %p210_p2  ;;  %p32_p4 = scmp.ge.s32.totalorder %s3515_s23, 4 }
   0xa   : > { %s3517_s23 = smov (%p32_p4, %s3515_s23), 0  ;;  %s3519_s24 = smov (!%p32_p4, %s34_s24), %s2986_s20 }
   0xb   : > { %p36_p5 = scmp.ge.s32.totalorder %s3519_s24, 2  ;;  %214 = sbr.rel (%p211_p3) target bundleno = 438 (0x1b6), region = 28 }
   0xd   : > { %s3521_s24 = smov (%p36_p5, %s3519_s24), 0 }
  0x10   : > { %s251_s25 = smul.u32 6, %s2974_s17  ;;  %s2160_s26 = sshll.u32 %s2974_s17, 2 }
  0x11   : > { %s263_s27 = sadd.s32 %s2970_s16, %s2160_s26  ;;  %p2165_p8 = scmp.ne.s32.totalorder %s2966_s15, 0 }
  0x12   : > { %s252_s28 = sadd.s32 %s2970_s16, %s251_s25  ;;  %p264_p6 = scmp.lt.s32.totalorder %s263_s27, 7 }
  0x13   : > { %s253_s29 = sadd.s32 %s2966_s15, %s252_s28 }
  0x14   : > { %p254_p7 = scmp.lt.s32.totalorder %s253_s29, 11  ;;  %s3523_s27 = smov (!%p264_p6, %s263_s27), 7 }
  0x15   : > { %s2424_s30 = sshll.u32 %s3523_s27, 5  ;;  %s275_s7 = scalar_lea.vmem %s3492_s3, %s3523_s27 }
  0x16   : > { %s3525_s29 = smov (!%p254_p7, %s253_s29), 11  ;;  %s3073_s11 = scalar_lea.vmem %s3491_s2, %s2424_s30 }
  0x17   : > { %s2797_s8 = smul.u32 80, %s3525_s29  ;;  %s282_s14 = scalar_lea.vmem %s3493_s4, %s3523_s27 }
  0x18   : > { %289 = sbr.rel (%p2165_p8) target bundleno = 34 (0x22), region = 32 }
  0x19   : > { %s3082_s25 = scalar_lea.vmem %s3489_s0, %s2797_s8 }
  0x1d   : > { %v2992_v0 = vmov 0.0  }
  0x1e   : > { %290 = vst [vmem:[#allocation2 + $0x30] sm:$0xff] %v2992_v0  ;;  %291 = vst [vmem:[#allocation2] sm:$0xff] %v2992_v0 }
  0x1f   : > { %292 = vst [vmem:[#allocation2 + $0x18] sm:$0xff] %v2992_v0  ;;  %293 = vst [vmem:[#allocation2 + $0x10] sm:$0xff] %v2992_v0 }
  0x20   : > { %294 = vst [vmem:[#allocation2 + $0x8] sm:$0xff] %v2992_v0  ;;  %295 = vst [vmem:[#allocation2 + $0x20] sm:$0xff] %v2992_v0 }
  0x21   : > { %296 = vst [vmem:[#allocation2 + $0x28] sm:$0xff] %v2992_v0  ;;  %297 = vst [vmem:[#allocation2 + $0x38] sm:$0xff] %v2992_v0 }
  0x22 PF: > { %s2425_s26 = smul.u32 576, %s2966_s15  ;;  %v3087_v1 = vld [vmem:[%s3082_s25] sm:$0xf]  ;;  %v3090_v2 = vld [vmem:[%s3082_s25 + $0x8] sm:$0xf]  ;;  %vm747_vm3 = vcmask 1042432  }
  0x23   : > { %v2197_v3 = vcombine.low %v3087_v1, %v3090_v2  ;;  %v342_v5 = vshrl.u32 %v3087_v1, 16  ;;  %v3103_v7 = vld [vmem:[%s3082_s25 + $0x4] sm:$0x1]  ;;  %v345_v8 = vshll.u32 %v3087_v1, 16  ;;  %v3111_v15 = vld [vmem:[%s3082_s25 + $0xc] sm:$0x1] }
  0x24   : > { %s3095_s30 = scalar_lea.vmem %s3490_s1, %s2425_s26  ;;  %vm338_vm0 = vsmask.f32 3328  ;;  %vm339_vm1 = vsmask.f32 7440  ;;  %v356_v16 = vshrl.u32 %v3090_v2, 16  ;;  %v351_v17 = vshll.u32 %v3103_v7, 16 }
  0x25   : > { %v2855_v4 = vld [vmem:[%s3095_s30 + $0x78] sm:$0xff]   ;;  %2605 = vmatprep.mubr.bf16.mxu1 %v2197_v3  ;;  %v2857_v9 = vld [vmem:[%s3095_s30 + $0x70] sm:$0xff]   ;;  %v344_v11 = vrot.slane %v342_v5, 4  ;;  %v2859_v12 = vld [vmem:[%s3095_s30 + $0x68] sm:$0xff]   ;;  %v347_v13 = vrot.slane %v345_v8, 5  ;;  %v359_v23 = vshll.u32 %v3090_v2, 16 }
  0x26   : > { %v2856_v6 = vld [vmem:[%s3095_s30 + $0x38] sm:$0xff]   ;;  %2565 = vmatprep.subr.bf16.mxu0 %v2855_v4  ;;  %v2858_v10 = vld [vmem:[%s3095_s30 + $0x30] sm:$0xff]   ;;  %v2860_v14 = vld [vmem:[%s3095_s30 + $0x28] sm:$0xff]   ;;  %v358_v22 = vrot.slane %v356_v16, 4  ;;  %v353_v24 = vrot.slane %v351_v17, 5  ;;  %v365_v25 = vshll.u32 %v3111_v15, 16 }
  0x27   : > { %2589 = vmatprep.subr.bf16.mxu1 %v2856_v6  ;;  %2566 = vmatpush3.bf16.msra.mxu0 %v2855_v4  ;;  %v2861_v18 = vld [vmem:[%s3095_s30 + $0x60] sm:$0xff]   ;;  %v3118_v20 = vld [vmem:[%s3082_s25 + $0x10] sm:$0xf]  ;;  %v348_v21 = vor.u32 %v347_v13, %v344_v11  ;;  %v2863_v26 = vld [vmem:[%s3095_s30 + $0x58] sm:$0xff]   ;;  %v361_v27 = vrot.slane %v359_v23, 5  ;;  %v752_v61 = vrot.slane %v3103_v7, 5 }
  0x28   : > { %2590 = vmatpush3.bf16.msra.mxu1 %v2856_v6  ;;  %2567 = vmatprep.subr.bf16.mxu0 %v2857_v9  ;;  %v2862_v19 = vld [vmem:[%s3095_s30 + $0x20] sm:$0xff]   ;;  %v2864_v28 = vld [vmem:[%s3095_s30 + $0x18] sm:$0xff]   ;;  %v3125_v30 = vld [vmem:[%s3082_s25 + $0x14] sm:$0x1]  ;;  %v367_v32 = vrot.slane %v365_v25, 5  ;;  %v370_v33 = vshrl.u32 %v3118_v20, 16 }
  0x29   : > { %2591 = vmatprep.subr.bf16.mxu1 %v2858_v10  ;;  %v349_v29 = vrot.slane %v348_v21, 4  ;;  %v362_v31 = vor.u32 %v361_v27, %v358_v22  ;;  %v373_v34 = vshll.u32 %v3118_v20, 16  ;;  %v2865_v36 = vld [vmem:[%s3095_s30 + $0x50] sm:$0xff]   ;;  %vm3132_vm2 = vmor %vm338_vm0, %vm339_vm1  ;;  %v3137_v40 = vld [vmem:[%s3082_s25 + $0x18] sm:$0xf]  ;;  %v379_v46 = vshll.u32 %v3125_v30, 16 }
  0x2a   : > { %v372_v38 = vrot.slane %v370_v33, 4  ;;  %v2866_v41 = vld [vmem:[%s3095_s30 + $0x10] sm:$0xff]   ;;  %v3147_v44 = vld [vmem:[%s3082_s25 + $0x1c] sm:$0x1]  ;;  %v384_v48 = vshrl.u32 %v3137_v40, 16  ;;  %v387_v49 = vshll.u32 %v3137_v40, 16  ;;  %v3198_v21 = vcombine.low %v3118_v20, %v3137_v40 }
  0x2b   : > { %2568 = vmatpush3.bf16.msra.mxu0 %v2857_v9  ;;  %v363_v35 = vrot.slane %v362_v31, 4  ;;  %v375_v39 = vrot.slane %v373_v34, 5  ;;  %v354_v42 = vsel %vm3132_vm2, %v349_v29, %v353_v24  ;;  %v393_v50 = vshll.u32 %v3147_v44, 16  ;;  %v2867_v51 = vld [vmem:[%s3095_s30 + $0x48] sm:$0xff]   ;;  %v2869_v57 = vld [vmem:[%s3095_s30 + $0x40] sm:$0xff]   ;;  %v2873_v3 = vld [vmem:[%s3095_s30 + $0xb8] sm:$0xff]  }
  0x2c   : > { %2592 = vmatpush3.bf16.msra.mxu1 %v2858_v10  ;;  %2569 = vmatprep.subr.bf16.mxu0 %v2859_v12  ;;  %v386_v52 = vrot.slane %v384_v48, 4  ;;  %v2868_v53 = vld [vmem:[%s3095_s30 + $0x8] sm:$0xff]   ;;  %v389_v54 = vrot.slane %v387_v49, 5  ;;  %v381_v56 = vrot.slane %v379_v46, 5  ;;  %v2870_v60 = vld [vmem:[%s3095_s30] sm:$0xff]   ;;  %v756_v0 = vrot.slane %v3111_v15, 5 }
  0x2d   : > { %2593 = vmatprep.subr.bf16.mxu1 %v2860_v14  ;;  %v3144_v43 = vsel %vm3132_vm2, %v363_v35, %v367_v32  ;;  %v376_v45 = vor.u32 %v375_v39, %v372_v38  ;;  %v395_v59 = vrot.slane %v393_v50, 5  ;;  %v2874_v5 = vld [vmem:[%s3095_s30 + $0xf8] sm:$0xff]   ;;  %vm748_vm4 = vcmask 1046532   ;;  %v3171_v6 = vld [vmem:[%s3082_s25 + $0x20] sm:$0xf]  ;;  %v2876_v22 = vld [vmem:[%s3095_s30 + $0xf0] sm:$0xff]  }
  0x2e   : > { %v2185_v47 = vcombine.low %v354_v42, %v3144_v43  ;;  %v390_v58 = vor.u32 %v389_v54, %v386_v52  ;;  %v2209_v8 = vrot.slane %v3087_v1, 9  ;;  %v2210_v9 = vrot.slane %v3090_v2, 9  ;;  %v3180_v11 = vld [vmem:[%s3082_s25 + $0x24] sm:$0x1]  ;;  %v3186_v13 = vld [vmem:[%s3082_s25 + $0x2c] sm:$0x1]  ;;  %vm3227_vm5 = vmor %vm747_vm3, %vm748_vm4 }
  0x2f   : > { %2570 = vmatpush3.bf16.msra.mxu0 %v2859_v12  ;;  %v377_v55 = vrot.slane %v376_v45, 4  ;;  %v3183_v12 = vld [vmem:[%s3082_s25 + $0x28] sm:$0xf]  ;;  %v398_v16 = vshrl.u32 %v3171_v6, 16  ;;  %v401_v1 = vshll.u32 %v3171_v6, 16  ;;  %v407_v17 = vshll.u32 %v3180_v11, 16 }
  0x30   : > { %2594 = vmatpush3.bf16.msra.mxu1 %v2860_v14  ;;  %2571 = vmatprep.subr.bf16.mxu0 %v2861_v18  ;;  %v391_v62 = vrot.slane %v390_v58, 4  ;;  %v2875_v14 = vld [vmem:[%s3095_s30 + $0xb0] sm:$0xff]   ;;  %v415_v23 = vshll.u32 %v3183_v12, 16  ;;  %v421_v24 = vshll.u32 %v3186_v13, 16  ;;  %v3205_v25 = vcombine.low %v3171_v6, %v3183_v12  ;;  %v3211_v27 = vld [vmem:[%s3082_s25 + $0x38] sm:$0xf] }
  0x31   : > { %2595 = vmatprep.subr.bf16.mxu1 %v2862_v19  ;;  %2581 = vmatprep.mubr.bf16.mxu0 %v2185_v47  ;;  %v3161_v63 = vsel %vm3132_vm2, %v377_v55, %v381_v56  ;;  %v403_v29 = vrot.slane %v401_v1, 5  ;;  %v409_v31 = vrot.slane %v407_v17, 5  ;;  %v3214_v33 = vld [vmem:[%s3082_s25 + $0x3c] sm:$0x1]  ;;  %v440_v42 = vshrl.u32 %v3211_v27, 16  ;;  %v2877_v46 = vld [vmem:[%s3095_s30 + $0xa8] sm:$0xff]  }
  0x32   : > { %v3167_v4 = vsel %vm3132_vm2, %v391_v62, %v395_v59  ;;  %v417_v34 = vrot.slane %v415_v23, 5  ;;  %v423_v35 = vrot.slane %v421_v24, 5  ;;  %v443_v45 = vshll.u32 %v3211_v27, 16  ;;  %v2878_v52 = vld [vmem:[%s3095_s30 + $0xe8] sm:$0xff]   ;;  %v2880_v17 = vld [vmem:[%s3095_s30 + $0xe0] sm:$0xff]   ;;  %v2881_v23 = vld [vmem:[%s3095_s30 + $0x98] sm:$0xff]  }
  0x33   : > { %2572 = vmatpush3.bf16.msra.mxu0 %v2861_v18  ;;  %v3177_v10 = vcombine.low %v3161_v63, %v3167_v4  ;;  %v412_v18 = vshrl.u32 %v3183_v12, 16  ;;  %v449_v50 = vshll.u32 %v3214_v33, 16  ;;  %v442_v54 = vrot.slane %v440_v42, 4  ;;  %v2882_v24 = vld [vmem:[%s3095_s30 + $0xd8] sm:$0xff]   ;;  %p2413_p9 = scmp.ne.s32.totalorder %s2966_s15, 2 }
  0x34   : > { %2596 = vmatpush3.bf16.msra.mxu1 %v2862_v19  ;;  %2573 = vmatprep.subr.bf16.mxu0 %v2863_v26  ;;  %v3194_v19 = vld [vmem:[%s3082_s25 + $0x30] sm:$0xf]  ;;  %v445_v55 = vrot.slane %v443_v45, 5  ;;  %v3255_v7 = vsel %vm3227_vm5, %v2210_v9, %v756_v0  ;;  %v2214_v42 = vrot.slane %v3183_v12, 9  ;;  %v772_v45 = vrot.slane %v3186_v13, 5  ;;  %v2932_v37 = vld [vmem:[%s3095_s30 + $0x218] sm:$0xff]  }
  0x35   : > { %2597 = vmatprep.subr.bf16.mxu1 %v2864_v28  ;;  %v414_v32 = vrot.slane %v412_v18, 4  ;;  %v429_v38 = vshll.u32 %v3194_v19, 16  ;;  %v451_v62 = vrot.slane %v449_v50, 5  ;;  %v3247_v1 = vcombine.low %v3194_v19, %v3211_v27 }
  0x36   : > { %v2263_v18 = vcombine.low %v3090_v2, %v3118_v20  ;;  %v2885_v2 = vld [vmem:[%s3095_s30 + $0x90] sm:$0xff]   ;;  %v2215_v13 = vrot.slane %v3194_v19, 9 }
  0x37   : > { %2574 = vmatpush3.bf16.msra.mxu0 %v2863_v26  ;;  %v3208_v26 = vld [vmem:[%s3082_s25 + $0x34] sm:$0x1]  ;;  %v418_v47 = vor.u32 %v417_v34, %v414_v32  ;;  %v431_v49 = vrot.slane %v429_v38, 5  ;;  %v764_v32 = vrot.slane %v3147_v44, 5  ;;  %v2888_v34 = vld [vmem:[%s3095_s30 + $0xc8] sm:$0xff]   ;;  %v2889_v38 = vld [vmem:[%s3095_s30 + $0x80] sm:$0xff]  }
  0x38   : > { %2598 = vmatpush3.bf16.msra.mxu1 %v2864_v28  ;;  %2575 = vmatprep.subr.bf16.mxu0 %v2865_v36  ;;  %v400_v28 = vrot.slane %v398_v16, 4  ;;  %v776_v50 = vrot.slane %v3208_v26, 5 }
  0x39   : > { %2599 = vmatprep.subr.bf16.mxu1 %v2866_v41  ;;  %v419_v56 = vrot.slane %v418_v47, 4  ;;  %v2894_v47 = vld [vmem:[%s3095_s30 + $0x178] sm:$0xff]  }
  0x3a   : > { %v404_v39 = vor.u32 %v403_v29, %v400_v28  ;;  %v2886_v28 = vld [vmem:[%s3095_s30 + $0xd0] sm:$0xff]   ;;  %v760_v29 = vrot.slane %v3125_v30, 5  ;;  %v2213_v30 = vrot.slane %v3171_v6, 9 }
  0x3b   : > { %2576 = vmatpush3.bf16.msra.mxu0 %v2865_v36  ;;  %v426_v36 = vshrl.u32 %v3194_v19, 16 }
  0x3c   : > { %2600 = vmatpush3.bf16.msra.mxu1 %v2866_v41  ;;  %2577 = vmatprep.subr.bf16.mxu0 %v2867_v51  ;;  %v435_v41 = vshll.u32 %v3208_v26, 16 }
  0x3d   : > { %2601 = vmatprep.subr.bf16.mxu1 %v2868_v53  ;;  %v428_v48 = vrot.slane %v426_v36, 4  ;;  %v2212_v36 = vrot.slane %v3137_v40, 9 }
  0x3e   : > { %v437_v58 = vrot.slane %v435_v41, 5  ;;  %v768_v41 = vrot.slane %v3180_v11, 5 }
  0x3f   : > { %2578 = vmatpush3.bf16.msra.mxu0 %v2867_v51 }
  0x40   : > { %2602 = vmatpush3.bf16.msra.mxu1 %v2868_v53  ;;  %2579 = vmatprep.subr.bf16.mxu0 %v2869_v57  ;;  %v405_v53 = vrot.slane %v404_v39, 4  ;;  %v2890_v39 = vld [vmem:[%s3095_s30 + $0xc0] sm:$0xff]  }
  0x41   : > { %2603 = vmatprep.subr.bf16.mxu1 %v2870_v60 }
  0x42   : > { %v3235_v59 = vsel %vm3132_vm2, %v405_v53, %v409_v31  ;;  %v2887_v31 = vld [vmem:[%s3095_s30 + $0x88] sm:$0xff]   ;;  %v2216_v53 = vrot.slane %v3211_v27, 9 }
  0x43   : > { %2580 = vmatpush3.bf16.msra.mxu0 %v2869_v57  ;;  %v432_v57 = vor.u32 %v431_v49, %v428_v48  ;;  %v3310_v48 = vsel %vm3227_vm5, %v2213_v30, %v768_v41  ;;  %v3314_v49 = vsel %vm3227_vm5, %v2214_v42, %v772_v45  ;;  %v2913_v41 = vld [vmem:[%s3095_s30 + $0x1b0] sm:$0xff]  }
  0x44   : > { %2604 = vmatpush3.bf16.msra.mxu1 %v2870_v60  ;;  %2613 = vmatprep.subr.bf16.mxu0 %v2873_v3  ;;  %v446_v60 = vor.u32 %v445_v55, %v442_v54  ;;  %v780_v54 = vrot.slane %v3214_v33, 5  ;;  %v2895_v55 = vld [vmem:[%s3095_s30 + $0x130] sm:$0xff]   ;;  %v2897_v33 = vld [vmem:[%s3095_s30 + $0x128] sm:$0xff]  }
  0x45   : > { %2637 = vmatprep.subr.bf16.mxu1 %v2874_v5  ;;  %v433_v16 = vrot.slane %v432_v57, 4  ;;  %v3326_v57 = vcombine.low %v3310_v48, %v3314_v49  ;;  %v2914_v45 = vld [vmem:[%s3095_s30 + $0x1f0] sm:$0xff]  }
  0x46   : > { %2582 = vmatmul.mubr.bf16.vlgmr.msra.gmra.mxu0 %v3177_v10  ;;  %v3337_v26 = vsel %vm3227_vm5, %v2216_v53, %v780_v54  ;;  %v3403_v53 = vld [vmem:[%s3082_s25 + $0x48] sm:$0xf]  ;;  %v2922_v54 = vld [vmem:[%s3095_s30 + $0x1d0] sm:$0xff]  }
  0x47   : > { %2606 = vmatmul.mubr.bf16.vlgmr.msra.gmra.mxu1 %v3198_v21  ;;  %2614 = vmatpush3.bf16.msra.mxu0 %v2873_v3  ;;  %v753_v3 = vsel %vm3227_vm5, %v2209_v8, %v752_v61  ;;  %v2879_v61 = vld [vmem:[%s3095_s30 + $0xa0] sm:$0xff]   ;;  %v3265_v15 = vsel %vm3132_vm2, %v433_v16, %v437_v58 }
  0x48   : > { %2638 = vmatpush3.bf16.msra.mxu1 %v2874_v5  ;;  %2615 = vmatprep.subr.bf16.mxu0 %v2875_v14  ;;  %v3243_v5 = vsel %vm3132_vm2, %v419_v56, %v423_v35  ;;  %v2234_v9 = vcombine.low %v753_v3, %v3255_v7  ;;  %v2211_v35 = vrot.slane %v3118_v20, 9  ;;  %v3299_v20 = vsel %vm3227_vm5, %v2212_v36, %v764_v32  ;;  %v2896_v56 = vld [vmem:[%s3095_s30 + $0x170] sm:$0xff]   ;;  %v3341_v58 = vld [vmem:[%s3082_s25 + $0x40] sm:$0xf] }
  0x49   : > { %2639 = vmatprep.subr.bf16.mxu1 %v2876_v22  ;;  %2609 = vmatprep.mubr.bf16.mxu1 %v3205_v25  ;;  %v3260_v8 = vcombine.low %v3235_v59, %v3243_v5  ;;  %v2292_v3 = vcombine.low %v3144_v43, %v3161_v63  ;;  %v2902_v16 = vld [vmem:[%s3095_s30 + $0x160] sm:$0xff]   ;;  %v2905_v43 = vld [vmem:[%s3095_s30 + $0x110] sm:$0xff]   ;;  %v2293_v36 = vcombine.low %v3167_v4, %v3235_v59 }
  0x4a   : > { %v761_v44 = vsel %vm3227_vm5, %v2211_v35, %v760_v29  ;;  %v2906_v63 = vld [vmem:[%s3095_s30 + $0x150] sm:$0xff]   ;;  %v2910_v29 = vld [vmem:[%s3095_s30 + $0x140] sm:$0xff]   ;;  %v2912_v35 = vld [vmem:[%s3095_s30 + $0x1f8] sm:$0xff]  }
  0x4b   : > { %2616 = vmatpush3.bf16.msra.mxu0 %v2875_v14  ;;  %v447_v14 = vrot.slane %v446_v60, 4  ;;  %2585 = vmatprep.mubr.bf16.mxu0 %v3260_v8  ;;  %v3305_v11 = vcombine.low %v761_v44, %v3299_v20  ;;  %v2266_v60 = vcombine.low %v3211_v27, %v3341_v58  ;;  %v2904_v27 = vld [vmem:[%s3095_s30 + $0x158] sm:$0xff]  }
  0x4c   : > { %2640 = vmatpush3.bf16.msra.mxu1 %v2876_v22  ;;  %2617 = vmatprep.subr.bf16.mxu0 %v2877_v46 }
  0x4d   : > { %2641 = vmatprep.subr.bf16.mxu1 %v2878_v52  ;;  %v3270_v0 = vsel %vm3132_vm2, %v447_v14, %v451_v62  ;;  %v2901_v62 = vld [vmem:[%s3095_s30 + $0x120] sm:$0xff]   ;;  %v2903_v14 = vld [vmem:[%s3095_s30 + $0x118] sm:$0xff]  }
  0x4e   : > { %v3277_v22 = vcombine.low %v3265_v15, %v3270_v0 }
  0x4f   : > { %2618 = vmatpush3.bf16.msra.mxu0 %v2877_v46  ;;  %2610 = vmatmul.mubr.bf16.gmra.mxu1 %v3247_v1  ;;  %v2893_v46 = vld [vmem:[%s3095_s30 + $0x138] sm:$0xff]  }
  0x50   : > { %2642 = vmatpush3.bf16.msra.mxu1 %v2878_v52  ;;  %2619 = vmatprep.subr.bf16.mxu0 %v2879_v61  ;;  %v2264_v52 = vcombine.low %v3137_v40, %v3171_v6  ;;  %v2265_v40 = vcombine.low %v3183_v12, %v3194_v19  ;;  %v3333_v6 = vsel %vm3227_vm5, %v2215_v13, %v776_v50  ;;  %v2898_v12 = vld [vmem:[%s3095_s30 + $0x168] sm:$0xff]   ;;  %v2918_v13 = vld [vmem:[%s3095_s30 + $0x1e0] sm:$0xff]   ;;  %v2920_v50 = vld [vmem:[%s3095_s30 + $0x1d8] sm:$0xff]  }
  0x51   : > { %2643 = vmatprep.subr.bf16.mxu1 %v2880_v17  ;;  %2586 = vmatmul.mubr.bf16.gmra.mxu0 %v3277_v22  ;;  %v3347_v19 = vcombine.low %v3333_v6, %v3337_v26  ;;  %v2324_v4 = vcombine.low %v3314_v49, %v3333_v6  ;;  %v2917_v49 = vld [vmem:[%s3095_s30 + $0x1a0] sm:$0xff]  }
  0x52   : > { %2629 = vmatprep.mubr.bf16.mxu0 %v2234_v9  ;;  %2653 = vmatprep.mubr.bf16.mxu1 %v2263_v18  ;;  %v2907_v9 = vld [vmem:[%s3095_s30 + $0x108] sm:$0xff]  }
  0x53   : > { %2620 = vmatpush3.bf16.msra.mxu0 %v2879_v61  ;;  %v2322_v61 = vcombine.low %v3255_v7, %v761_v44  ;;  %v1091_v7 = vshrl.u32 %v3341_v58, 16  ;;  %v2908_v18 = vld [vmem:[%s3095_s30 + $0x148] sm:$0xff]   ;;  %v2304_v44 = vrot.slane %v3341_v58, 9 }
  0x54   : > { %2644 = vmatpush3.bf16.msra.mxu1 %v2880_v17  ;;  %2621 = vmatprep.subr.bf16.mxu0 %v2881_v23  ;;  %v1094_v17 = vshll.u32 %v3341_v58, 16 }
  0x55   : > { %2645 = vmatprep.subr.bf16.mxu1 %v2882_v24 }
  0x57   : > { %2622 = vmatpush3.bf16.msra.mxu0 %v2881_v23  ;;  %v1093_v23 = vrot.slane %v1091_v7, 4 }
  0x58   : > { %2646 = vmatpush3.bf16.msra.mxu1 %v2882_v24  ;;  %2623 = vmatprep.subr.bf16.mxu0 %v2885_v2  ;;  %v1096_v24 = vrot.slane %v1094_v17, 5 }
  0x59   : > { %2647 = vmatprep.subr.bf16.mxu1 %v2886_v28 }
  0x5b   : > { %2624 = vmatpush3.bf16.msra.mxu0 %v2885_v2  ;;  %v2909_v2 = vld [vmem:[%s3095_s30 + $0x100] sm:$0xff]  }
  0x5c   : > { %2648 = vmatpush3.bf16.msra.mxu1 %v2886_v28  ;;  %2625 = vmatprep.subr.bf16.mxu0 %v2887_v31  ;;  %v315_v28 = vld [vmem:[%s3082_s25 + $0x44] sm:$0x1] }
  0x5d   : > { %2649 = vmatprep.subr.bf16.mxu1 %v2888_v34  ;;  %v1100_v32 = vshll.u32 %v315_v28, 16  ;;  %v1257_v42 = vrot.slane %v315_v28, 5 }
  0x5f   : > { %2626 = vmatpush3.bf16.msra.mxu0 %v2887_v31  ;;  %v1097_v31 = vor.u32 %v1096_v24, %v1093_v23  ;;  %v1102_v30 = vrot.slane %v1100_v32, 5 }
  0x60   : > { %2650 = vmatpush3.bf16.msra.mxu1 %v2888_v34  ;;  %2627 = vmatprep.subr.bf16.mxu0 %v2889_v38  ;;  %v2911_v34 = vld [vmem:[%s3095_s30 + $0x1b8] sm:$0xff]  }
  0x61   : > { %2651 = vmatprep.subr.bf16.mxu1 %v2890_v39 }
  0x63   : > { %2628 = vmatpush3.bf16.msra.mxu0 %v2889_v38  ;;  %v2323_v38 = vcombine.low %v3299_v20, %v3310_v48  ;;  %v2915_v20 = vld [vmem:[%s3095_s30 + $0x1a8] sm:$0xff]  }
  0x64   : > { %2652 = vmatpush3.bf16.msra.mxu1 %v2890_v39  ;;  %2661 = vmatprep.subr.bf16.mxu0 %v2893_v46  ;;  %v1098_v39 = vrot.slane %v1097_v31, 4 }
  0x65   : > { %2685 = vmatprep.subr.bf16.mxu1 %v2894_v47 }
  0x66   : > { %2630 = vmatmul.mubr.bf16.vlgmr.msra.gmra.mxu0 %v3305_v11  ;;  %v3383_v59 = vsel %vm3132_vm2, %v1098_v39, %v1102_v30 }
  0x67   : > { %2654 = vmatmul.mubr.bf16.vlgmr.msra.gmra.mxu1 %v2264_v52  ;;  %2662 = vmatpush3.bf16.msra.mxu0 %v2893_v46  ;;  %v2294_v46 = vcombine.low %v3243_v5, %v3265_v15  ;;  %v2916_v5 = vld [vmem:[%s3095_s30 + $0x1e8] sm:$0xff]   ;;  %v2295_v15 = vcombine.low %v3270_v0, %v3383_v59  ;;  %v2919_v0 = vld [vmem:[%s3095_s30 + $0x198] sm:$0xff]   ;;  %v2921_v52 = vld [vmem:[%s3095_s30 + $0x190] sm:$0xff]  }
  0x68   : > { %2686 = vmatpush3.bf16.msra.mxu1 %v2894_v47  ;;  %2663 = vmatprep.subr.bf16.mxu0 %v2895_v55  ;;  %v3388_v47 = vsel %vm3227_vm5, %v2304_v44, %v1257_v42 }
  0x69   : > { %2687 = vmatprep.subr.bf16.mxu1 %v2896_v56  ;;  %2633 = vmatprep.mubr.bf16.mxu0 %v3326_v57  ;;  %v2325_v48 = vcombine.low %v3337_v26, %v3388_v47 }
  0x6a   : > { %2657 = vmatprep.mubr.bf16.mxu1 %v2265_v40  ;;  %v2925_v40 = vld [vmem:[%s3095_s30 + $0x180] sm:$0xff]  }
  0x6b   : > { %2664 = vmatpush3.bf16.msra.mxu0 %v2895_v55  ;;  %v2923_v55 = vld [vmem:[%s3095_s30 + $0x188] sm:$0xff]  }
  0x6c   : > { %2688 = vmatpush3.bf16.msra.mxu1 %v2896_v56  ;;  %2665 = vmatprep.subr.bf16.mxu0 %v2897_v33  ;;  %v2924_v56 = vld [vmem:[%s3095_s30 + $0x1c8] sm:$0xff]  }
  0x6d   : > { %2689 = vmatprep.subr.bf16.mxu1 %v2898_v12 }
  0x6e   : > { %2634 = vmatmul.mubr.bf16.gmra.mxu0 %v3347_v19 }
  0x6f   : > { %2666 = vmatpush3.bf16.msra.mxu0 %v2897_v33  ;;  %2658 = vmatmul.mubr.bf16.gmra.mxu1 %v2266_v60  ;;  %v3412_v33 = vld [vmem:[%s3082_s25 + $0x4c] sm:$0x1]  ;;  %v2927_v60 = vld [vmem:[%s3095_s30 + $0x238] sm:$0xff]  }
  0x70   : > { %2690 = vmatpush3.bf16.msra.mxu1 %v2898_v12  ;;  %2667 = vmatprep.subr.bf16.mxu0 %v2901_v62  ;;  %v2926_v12 = vld [vmem:[%s3095_s30 + $0x1c0] sm:$0xff]   ;;  %v1715_v7 = vrot.slane %v3412_v33, 5 }
  0x71   : > { %2691 = vmatprep.subr.bf16.mxu1 %v2902_v16  ;;  %2677 = vmatprep.mubr.bf16.mxu0 %v2292_v3  ;;  %v1564_v3 = vshll.u32 %v3412_v33, 16 }
  0x72   : > { %2701 = vmatprep.mubr.bf16.mxu1 %v2322_v61 }
  0x73   : > { %2668 = vmatpush3.bf16.msra.mxu0 %v2901_v62 }
  0x74   : > { %2692 = vmatpush3.bf16.msra.mxu1 %v2902_v16  ;;  %2669 = vmatprep.subr.bf16.mxu0 %v2903_v14  ;;  %v2928_v16 = vld [vmem:[%s3095_s30 + $0x230] sm:$0xff]  }
  0x75   : > { %2693 = vmatprep.subr.bf16.mxu1 %v2904_v27 }
  0x77   : > { %2670 = vmatpush3.bf16.msra.mxu0 %v2903_v14  ;;  %v1566_v14 = vrot.slane %v1564_v3, 5 }
  0x78   : > { %2694 = vmatpush3.bf16.msra.mxu1 %v2904_v27  ;;  %2671 = vmatprep.subr.bf16.mxu0 %v2905_v43  ;;  %v2930_v27 = vld [vmem:[%s3095_s30 + $0x228] sm:$0xff]  }
  0x79   : > { %2695 = vmatprep.subr.bf16.mxu1 %v2906_v63 }
  0x7b   : > { %2672 = vmatpush3.bf16.msra.mxu0 %v2905_v43 }
  0x7c   : > { %2696 = vmatpush3.bf16.msra.mxu1 %v2906_v63  ;;  %2673 = vmatprep.subr.bf16.mxu0 %v2907_v9  ;;  %v2351_v63 = vcombine.low %v3341_v58, %v3403_v53  ;;  %v2386_v58 = vrot.slane %v3403_v53, 9 }
  0x7d   : > { %2697 = vmatprep.subr.bf16.mxu1 %v2908_v18 }
  0x7f   : > { %2674 = vmatpush3.bf16.msra.mxu0 %v2907_v9 }
  0x80   : > { %2698 = vmatpush3.bf16.msra.mxu1 %v2908_v18  ;;  %2675 = vmatprep.subr.bf16.mxu0 %v2909_v2 }
  0x81   : > { %2699 = vmatprep.subr.bf16.mxu1 %v2910_v29 }
  0x83   : > { %2676 = vmatpush3.bf16.msra.mxu0 %v2909_v2 }
  0x84   : > { %2700 = vmatpush3.bf16.msra.mxu1 %v2910_v29  ;;  %2709 = vmatprep.subr.bf16.mxu0 %v2911_v34 }
  0x85   : > { %2733 = vmatprep.subr.bf16.mxu1 %v2912_v35 }
  0x86   : > { %2678 = vmatmul.mubr.bf16.vlgmr.msra.gmra.mxu0 %v2293_v36 }
  0x87   : > { %2702 = vmatmul.mubr.bf16.vlgmr.msra.gmra.mxu1 %v2323_v38  ;;  %2710 = vmatpush3.bf16.msra.mxu0 %v2911_v34 }
  0x88   : > { %2734 = vmatpush3.bf16.msra.mxu1 %v2912_v35  ;;  %2711 = vmatprep.subr.bf16.mxu0 %v2913_v41 }
  0x89   : > { %2735 = vmatprep.subr.bf16.mxu1 %v2914_v45  ;;  %2681 = vmatprep.mubr.bf16.mxu0 %v2294_v46 }
  0x8a   : > { %2705 = vmatprep.mubr.bf16.mxu1 %v2324_v4 }
  0x8b   : > { %2712 = vmatpush3.bf16.msra.mxu0 %v2913_v41 }
  0x8c   : > { %2736 = vmatpush3.bf16.msra.mxu1 %v2914_v45  ;;  %2713 = vmatprep.subr.bf16.mxu0 %v2915_v20 }
  0x8d   : > { %2737 = vmatprep.subr.bf16.mxu1 %v2916_v5 }
  0x8e   : > { %2682 = vmatmul.mubr.bf16.gmra.mxu0 %v2295_v15 }
  0x8f   : > { %2714 = vmatpush3.bf16.msra.mxu0 %v2915_v20  ;;  %2706 = vmatmul.mubr.bf16.gmra.mxu1 %v2325_v48 }
  0x90   : > { %2738 = vmatpush3.bf16.msra.mxu1 %v2916_v5  ;;  %2715 = vmatprep.subr.bf16.mxu0 %v2917_v49 }
  0x91   : > { %2739 = vmatprep.subr.bf16.mxu1 %v2918_v13  ;;  %2725 = vmatprep.mubr.bf16.mxu0 %v3198_v21  ;;  %v1555_v21 = vshrl.u32 %v3403_v53, 16 }
  0x92   : > { %2749 = vmatprep.mubr.bf16.mxu1 %v3177_v10  ;;  %v1558_v10 = vshll.u32 %v3403_v53, 16 }
  0x93   : > { %2716 = vmatpush3.bf16.msra.mxu0 %v2917_v49  ;;  %v1557_v6 = vrot.slane %v1555_v21, 4 }
  0x94   : > { %2740 = vmatpush3.bf16.msra.mxu1 %v2918_v13  ;;  %2717 = vmatprep.subr.bf16.mxu0 %v2919_v0  ;;  %v1560_v26 = vrot.slane %v1558_v10, 5 }
  0x95   : > { %2741 = vmatprep.subr.bf16.mxu1 %v2920_v50 }
  0x96   : > { %v1561_v62 = vor.u32 %v1560_v26, %v1557_v6 }
  0x97   : > { %2718 = vmatpush3.bf16.msra.mxu0 %v2919_v0 }
  0x98   : > { %2742 = vmatpush3.bf16.msra.mxu1 %v2920_v50  ;;  %2719 = vmatprep.subr.bf16.mxu0 %v2921_v52  ;;  %v1562_v61 = vrot.slane %v1561_v62, 4 }
  0x99   : > { %2743 = vmatprep.subr.bf16.mxu1 %v2922_v54 }
  0x9a   : > { %v1567_v43 = vsel %vm3132_vm2, %v1562_v61, %v1566_v14 }
  0x9b   : > { %2720 = vmatpush3.bf16.msra.mxu0 %v2921_v52 }
  0x9c   : > { %2744 = vmatpush3.bf16.msra.mxu1 %v2922_v54  ;;  %2721 = vmatprep.subr.bf16.mxu0 %v2923_v55 }
  0x9d   : > { %2745 = vmatprep.subr.bf16.mxu1 %v2924_v56 }
  0x9f   : > { %2722 = vmatpush3.bf16.msra.mxu0 %v2923_v55 }
  0xa0   : > { %2746 = vmatpush3.bf16.msra.mxu1 %v2924_v56  ;;  %2723 = vmatprep.subr.bf16.mxu0 %v2925_v40 }
  0xa1   : > { %2747 = vmatprep.subr.bf16.mxu1 %v2926_v12 }
  0xa3   : > { %2724 = vmatpush3.bf16.msra.mxu0 %v2925_v40 }
  0xa4   : > { %2748 = vmatpush3.bf16.msra.mxu1 %v2926_v12  ;;  %2757 = vmatprep.subr.bf16.mxu0 %v2927_v60 }
  0xa5   : > { %2781 = vmatprep.subr.bf16.mxu1 %v2927_v60 }
  0xa6   : > { %2726 = vmatmul.mubr.bf16.vlgmr.msra.gmra.mxu0 %v3205_v25  ;;  %v2377_v25 = vcombine.low %v3383_v59, %v1567_v43 }
  0xa7   : > { %2750 = vmatmul.mubr.bf16.vlgmr.msra.gmra.mxu1 %v3260_v8  ;;  %2758 = vmatpush3.bf16.msra.mxu0 %v2927_v60  ;;  %v2931_v8 = vld [vmem:[%s3095_s30 + $0x220] sm:$0xff]  }
  0xa8   : > { %2789 = vmatpush3.bf16.msra.mxu1 %v2927_v60  ;;  %2759 = vmatprep.subr.bf16.mxu0 %v2928_v16 }
  0xa9   : > { %2782 = vmatprep.subr.bf16.mxu1 %v2928_v16  ;;  %2729 = vmatprep.mubr.bf16.mxu0 %v3247_v1  ;;  %v2933_v1 = vld [vmem:[%s3095_s30 + $0x210] sm:$0xff]  }
  0xaa   : > { %2753 = vmatprep.mubr.bf16.mxu1 %v3277_v22  ;;  %v2934_v22 = vld [vmem:[%s3095_s30 + $0x208] sm:$0xff]  }
  0xab   : > { %2760 = vmatpush3.bf16.msra.mxu0 %v2928_v16 }
  0xac   : > { %2790 = vmatpush3.bf16.msra.mxu1 %v2928_v16  ;;  %2761 = vmatprep.subr.bf16.mxu0 %v2930_v27 }
  0xad   : > { %2783 = vmatprep.subr.bf16.mxu1 %v2930_v27 }
  0xae   : > { %2730 = vmatmul.mubr.bf16.gmra.mxu0 %v2351_v63 }
  0xaf   : > { %2762 = vmatpush3.bf16.msra.mxu0 %v2930_v27  ;;  %2754 = vmatmul.mubr.bf16.gmra.mxu1 %v2377_v25 }
  0xb0   : > { %2791 = vmatpush3.bf16.msra.mxu1 %v2930_v27  ;;  %2763 = vmatprep.subr.bf16.mxu0 %v2931_v8 }
  0xb1   : > { %2784 = vmatprep.subr.bf16.mxu1 %v2931_v8  ;;  %2773 = vmatprep.mubr.bf16.mxu0 %v3305_v11  ;;  %v2935_v11 = vld [vmem:[%s3095_s30 + $0x200] sm:$0xff]  }
  0xb2   : > { %2777 = vmatprep.mubr.bf16.mxu1 %v3347_v19  ;;  %v1716_v19 = vsel %vm3227_vm5, %v2386_v58, %v1715_v7 }
  0xb3   : > { %2764 = vmatpush3.bf16.msra.mxu0 %v2931_v8  ;;  %v2404_v17 = vcombine.low %v3388_v47, %v1716_v19 }
  0xb4   : > { %2792 = vmatpush3.bf16.msra.mxu1 %v2931_v8  ;;  %2765 = vmatprep.subr.bf16.mxu0 %v2932_v37 }
  0xb5   : > { %2785 = vmatprep.subr.bf16.mxu1 %v2932_v37 }
  0xb7   : > { %2766 = vmatpush3.bf16.msra.mxu0 %v2932_v37 }
  0xb8   : > { %2793 = vmatpush3.bf16.msra.mxu1 %v2932_v37  ;;  %2767 = vmatprep.subr.bf16.mxu0 %v2933_v1 }
  0xb9   : > { %2786 = vmatprep.subr.bf16.mxu1 %v2933_v1 }
  0xbb   : > { %2768 = vmatpush3.bf16.msra.mxu0 %v2933_v1 }
  0xbc   : > { %2794 = vmatpush3.bf16.msra.mxu1 %v2933_v1  ;;  %2769 = vmatprep.subr.bf16.mxu0 %v2934_v22 }
  0xbd   : > { %2787 = vmatprep.subr.bf16.mxu1 %v2934_v22 }
  0xbf   : > { %2770 = vmatpush3.bf16.msra.mxu0 %v2934_v22 }
  0xc0   : > { %2795 = vmatpush3.bf16.msra.mxu1 %v2934_v22  ;;  %2771 = vmatprep.subr.bf16.mxu0 %v2935_v11 }
  0xc1   : > { %2788 = vmatprep.subr.bf16.mxu1 %v2935_v11 }
  0xc3   : > { %2772 = vmatpush3.bf16.msra.mxu0 %v2935_v11 }
  0xc4   : > { %2796 = vmatpush3.bf16.msra.mxu1 %v2935_v11 }
  0xc6   : > { %2774 = vmatmul.mubr.bf16.vlgmr.msra.gmra.mxu0 %v3326_v57 }
  0xc7   : > { %2778 = vmatmul.mubr.bf16.vlgmr.msra.gmra.mxu1 %v2404_v17 }
 0x106   : > { %v2583_v9 = vpop.f32.mrf.mxu0 }
 0x107   : > { %v2607_v23 = vpop.f32.mrf.mxu1 }
 0x108   : > { %v571_v18 = vpop.f32.mrf.mxu0  ;;  %v717_v63 = vadd.f32 %v2607_v23, %v2583_v9 }
 0x109   : > { %v708_v2 = vpop.f32.mrf.mxu1 }
 0x10a   : > { %v2584_v24 = vpop.f32.mrf.mxu0  ;;  %v709_v1 = vadd.f32 %v708_v2, %v571_v18 }
 0x10b   : > { %v2608_v31 = vpop.f32.mrf.mxu1 }
 0x10c   : > { %v574_v28 = vpop.f32.mrf.mxu0  ;;  %v720_v11 = vadd.f32 %v2608_v31, %v2584_v24 }
 0x10d   : > { %v711_v32 = vpop.f32.mrf.mxu1 }
 0x10e   : > { %v712_v23 = vadd.f32 %v711_v32, %v574_v28 }
 0x10f   : > { %v2611_v34 = vpop.f32.mrf.mxu1 }
 0x111   : > { %v2587_v29 = vpop.f32.mrf.mxu0  ;;  %v724_v36 = vpop.f32.mrf.mxu1 }
 0x112   : > { %v733_v8 = vadd.f32 %v2611_v34, %v2587_v29 }
 0x113   : > { %v587_v51 = vpop.f32.mrf.mxu0  ;;  %v2612_v30 = vpop.f32.mrf.mxu1 }
 0x114   : > { %v725_v58 = vadd.f32 %v724_v36, %v587_v51 }
 0x115   : > { %v2588_v35 = vpop.f32.mrf.mxu0  ;;  %v727_v44 = vpop.f32.mrf.mxu1 }
 0x117   : > { %v590_v38 = vpop.f32.mrf.mxu0 }
 0x118   : > { %v728_v2 = vadd.f32 %v727_v44, %v590_v38 }
 0x126   : > { %v2631_v39 = vpop.f32.mrf.mxu0 }
 0x127   : > { %v2655_v57 = vpop.f32.mrf.mxu1  ;;  %v933_v22 = vadd.f32 %v2631_v39, %v717_v63 }
 0x128   : > { %v900_v41 = vpop.f32.mrf.mxu0 }
 0x129   : > { %v1051_v45 = vpop.f32.mrf.mxu1  ;;  %v931_v19 = vadd.f32 %v900_v41, %v709_v1 }
 0x12a   : > { %v2632_v42 = vpop.f32.mrf.mxu0 }
 0x12b   : > { %v2656_v4 = vpop.f32.mrf.mxu1  ;;  %v934_v29 = vadd.f32 %v2632_v42, %v720_v11  ;;  %v1082_v63 = vadd.f32 %v1051_v45, %v931_v19  ;;  %v1861_v11 = vld [vmem:[#allocation2 + $0x30] sm:$0xff] }
 0x12c   : > { %v903_v46 = vpop.f32.mrf.mxu0 }
 0x12d   : > { %v1054_v20 = vpop.f32.mrf.mxu1  ;;  %v932_v36 = vadd.f32 %v903_v46, %v712_v23  ;;  %v1085_v41 = vadd.f32 %v2656_v4, %v934_v29  ;;  %v1865_v23 = vld [vmem:[#allocation2 + $0x8] sm:$0xff] }
 0x12e   : > { %v2635_v59 = vpop.f32.mrf.mxu0 }
 0x12f   : > { %v2659_v5 = vpop.f32.mrf.mxu1  ;;  %v937_v7 = vadd.f32 %v2635_v59, %v733_v8 }
 0x130   : > { %v916_v47 = vpop.f32.mrf.mxu0 }
 0x131   : > { %v1067_v48 = vpop.f32.mrf.mxu1  ;;  %v1088_v18 = vadd.f32 %v2659_v5, %v937_v7 }
 0x132   : > { %v2636_v15 = vpop.f32.mrf.mxu0 }
 0x133   : > { %v2660_v13 = vpop.f32.mrf.mxu1 }
 0x134   : > { %v919_v49 = vpop.f32.mrf.mxu0 }
 0x135   : > { %v1070_v50 = vpop.f32.mrf.mxu1  ;;  %v936_v59 = vadd.f32 %v919_v49, %v728_v2 }
 0x146   : > { %v2679_v0 = vpop.f32.mrf.mxu0 }
 0x147   : > { %v2703_v53 = vpop.f32.mrf.mxu1 }
 0x148   : > { %v1215_v52 = vpop.f32.mrf.mxu0 }
 0x149   : > { %v1370_v55 = vpop.f32.mrf.mxu1  ;;  %v1246_v1 = vadd.f32 %v1215_v52, %v1082_v63 }
 0x14a   : > { %v2680_v54 = vpop.f32.mrf.mxu0 }
 0x14b   : > { %v2704_v10 = vpop.f32.mrf.mxu1  ;;  %v1249_v32 = vadd.f32 %v2680_v54, %v1085_v41  ;;  %v1401_v5 = vadd.f32 %v1370_v55, %v1246_v1  ;;  %v1862_v1 = vld [vmem:[#allocation2] sm:$0xff] }
 0x14c   : > { %v1218_v21 = vpop.f32.mrf.mxu0 }
 0x14d   : > { %v3441_v40 = vpop.f32.mrf.mxu1 }
 0x14e   : > { %v2683_v56 = vpop.f32.mrf.mxu0  ;;  %3498 = vst [vmem:[#allocation3_spill] sm:$0xff] %v3441_v40  ;;  %v736_v40 = vadd.f32 %v2612_v30, %v2588_v35 }
 0x14f   : > { %v2707_v6 = vpop.f32.mrf.mxu1  ;;  %v1252_v24 = vadd.f32 %v2683_v56, %v1088_v18  ;;  %v1404_v56 = vadd.f32 %v2704_v10, %v1249_v32  ;;  %v1867_v10 = vld [vmem:[#allocation2 + $0x28] sm:$0xff] }
 0x150   : > { %v1231_v26 = vpop.f32.mrf.mxu0  ;;  %v938_v39 = vadd.f32 %v2636_v15, %v736_v40 }
 0x151   : > { %v1386_v33 = vpop.f32.mrf.mxu1  ;;  %v1407_v42 = vadd.f32 %v2707_v6, %v1252_v24 }
 0x152   : > { %v2684_v12 = vpop.f32.mrf.mxu0  ;;  %v1089_v35 = vadd.f32 %v2660_v13, %v938_v39  ;;  %v1864_v39 = vld [vmem:[#allocation2 + $0x10] sm:$0xff] }
 0x153   : > { %v2708_v60 = vpop.f32.mrf.mxu1 }
 0x154   : > { %v1234_v62 = vpop.f32.mrf.mxu0  ;;  %v1253_v38 = vadd.f32 %v2684_v12, %v1089_v35 }
 0x155   : > { %v1389_v16 = vpop.f32.mrf.mxu1 }
 0x156   : > { %v1408_v52 = vadd.f32 %v2708_v60, %v1253_v38 }
 0x166   : > { %v2727_v3 = vpop.f32.mrf.mxu0 }
 0x167   : > { %v2751_v61 = vpop.f32.mrf.mxu1 }
 0x168   : > { %v1515_v14 = vpop.f32.mrf.mxu0 }
 0x169   : > { %v3443_v27 = vpop.f32.mrf.mxu1  ;;  %v1546_v4 = vadd.f32 %v1515_v14, %v1401_v5 }
 0x16a   : > { %3499 = vst [vmem:[#allocation4_spill] sm:$0xff] %v3443_v27  ;;  %v2728_v43 = vpop.f32.mrf.mxu0  ;;  %v935_v27 = vadd.f32 %v916_v47, %v725_v58  ;;  %v1083_v47 = vadd.f32 %v1054_v20, %v932_v36 }
 0x16b   : > { %v3445_v25 = vpop.f32.mrf.mxu1  ;;  %v1549_v54 = vadd.f32 %v2728_v43, %v1404_v56 }
 0x16c   : > { %3500 = vst [vmem:[#allocation5_spill] sm:$0xff] %v3445_v25  ;;  %v1518_v37 = vpop.f32.mrf.mxu0  ;;  %v1084_v25 = vadd.f32 %v2655_v57, %v933_v22  ;;  %v1086_v8 = vadd.f32 %v1067_v48, %v935_v27  ;;  %v1087_v57 = vadd.f32 %v1070_v50, %v936_v59  ;;  %v1247_v45 = vadd.f32 %v1218_v21, %v1083_v47  ;;  %v1863_v21 = vld [vmem:[#allocation2 + $0x18] sm:$0xff] }
 0x16d   : > { %v3447_v17 = vpop.f32.mrf.mxu1 }
 0x16e   : > { %3501 = vst [vmem:[#allocation6_spill] sm:$0xff] %v3447_v17  ;;  %v2731_v9 = vpop.f32.mrf.mxu0  ;;  %v1248_v51 = vadd.f32 %v2679_v0, %v1084_v25  ;;  %v1250_v30 = vadd.f32 %v1231_v26, %v1086_v8  ;;  %v1251_v49 = vadd.f32 %v1234_v62, %v1087_v57  ;;  %v3502_v26 = vld [vmem:[#allocation3_spill] sm:$0xff]  ;;  %v1868_v8 = vld [vmem:[#allocation2 + $0x38] sm:$0xff] }
 0x16f   : > { %v2755_v34 = vpop.f32.mrf.mxu1  ;;  %v1552_v0 = vadd.f32 %v2731_v9, %v1407_v42  ;;  %v1402_v20 = vadd.f32 %v3502_v26, %v1247_v45 }
 0x170   : > { %v1531_v31 = vpop.f32.mrf.mxu0  ;;  %v1403_v28 = vadd.f32 %v2703_v53, %v1248_v51  ;;  %v1405_v48 = vadd.f32 %v1386_v33, %v1250_v30  ;;  %v1406_v6 = vadd.f32 %v1389_v16, %v1251_v49 }
 0x171   : > { %v1689_v17 = vpop.f32.mrf.mxu1  ;;  %v1710_v12 = vadd.f32 %v2755_v34, %v1552_v0  ;;  %v1547_v33 = vadd.f32 %v1518_v37, %v1402_v20 }
 0x172   : > { %v2732_v44 = vpop.f32.mrf.mxu0  ;;  %v1548_v46 = vadd.f32 %v2727_v3, %v1403_v28  ;;  %v1550_v40 = vadd.f32 %v1531_v31, %v1405_v48  ;;  %v3503_v3 = vld [vmem:[#allocation4_spill] sm:$0xff]  ;;  %v1866_v28 = vld [vmem:[#allocation2 + $0x20] sm:$0xff] }
 0x173   : > { %v2756_v15 = vpop.f32.mrf.mxu1  ;;  %v1553_v27 = vadd.f32 %v2732_v44, %v1408_v52  ;;  %v1704_v25 = vadd.f32 %v3503_v3, %v1546_v4  ;;  %v3504_v19 = vld [vmem:[#allocation5_spill] sm:$0xff] }
 0x174   : > { %v1534_v13 = vpop.f32.mrf.mxu0  ;;  %v1706_v53 = vadd.f32 %v2751_v61, %v1548_v46  ;;  %v1708_v14 = vadd.f32 %v1689_v17, %v1550_v40  ;;  %v1707_v61 = vadd.f32 %v3504_v19, %v1549_v54 }
 0x175   : > { %v1692_v50 = vpop.f32.mrf.mxu1  ;;  %v1551_v60 = vadd.f32 %v1534_v13, %v1406_v6  ;;  %v1711_v29 = vadd.f32 %v2756_v15, %v1553_v27  ;;  %v3505_v37 = vld [vmem:[#allocation6_spill] sm:$0xff] }
 0x176   : > { %v1705_v63 = vadd.f32 %v3505_v37, %v1547_v33 }
 0x177   : > { %v1709_v59 = vadd.f32 %v1692_v50, %v1551_v60 }
 0x186   : > { %v2775_v55 = vpop.f32.mrf.mxu0 }
 0x187   : > { %v1855_v62 = vadd.f32 %v2775_v55, %v1706_v53  ;;  %v2779_v22 = vpop.f32.mrf.mxu1 }
 0x188   : > { %v1859_v58 = vadd.f32 %v2779_v22, %v1710_v12  ;;  %v1822_v7 = vpop.f32.mrf.mxu0 }
 0x189   : > { %v1871_v43 = vadd.f32 %v1863_v21, %v1855_v62  ;;  %v1853_v9 = vadd.f32 %v1822_v7, %v1704_v25  ;;  %v1838_v16 = vpop.f32.mrf.mxu1 }
 0x18a   : > { %v1875_v34 = vadd.f32 %v1867_v10, %v1859_v58  ;;  %v1857_v2 = vadd.f32 %v1838_v16, %v1708_v14  ;;  %v2776_v18 = vpop.f32.mrf.mxu0 }
 0x18b   : > { %1879 = vst [vmem:[#allocation2 + $0x18] sm:$0xff] %v1871_v43  ;;  %v1869_v36 = vadd.f32 %v1861_v11, %v1853_v9  ;;  %v1856_v17 = vadd.f32 %v2776_v18, %v1707_v61  ;;  %v2780_v51 = vpop.f32.mrf.mxu1 }
 0x18c   : > { %1883 = vst [vmem:[#allocation2 + $0x28] sm:$0xff] %v1875_v34  ;;  %v1873_v24 = vadd.f32 %v1865_v23, %v1857_v2  ;;  %v1860_v31 = vadd.f32 %v2780_v51, %v1711_v29  ;;  %v1825_v41 = vpop.f32.mrf.mxu0 }
 0x18d   : > { %1877 = vst [vmem:[#allocation2 + $0x30] sm:$0xff] %v1869_v36  ;;  %v1872_v35 = vadd.f32 %v1864_v39, %v1856_v17  ;;  %v1854_v30 = vadd.f32 %v1825_v41, %v1705_v63  ;;  %v1841_v47 = vpop.f32.mrf.mxu1 }
 0x18e   : > { %1881 = vst [vmem:[#allocation2 + $0x8] sm:$0xff] %v1873_v24  ;;  %v1876_v32 = vadd.f32 %v1868_v8, %v1860_v31  ;;  %v1858_v57 = vadd.f32 %v1841_v47, %v1709_v59  ;;  %1888 = sbr.rel (%p2413_p9) target bundleno = 438 (0x1b6), region = 36 }
 0x18f   : > { %1880 = vst [vmem:[#allocation2 + $0x10] sm:$0xff] %v1872_v35  ;;  %v1870_v42 = vadd.f32 %v1862_v1, %v1854_v30 }
 0x190   : > { %1884 = vst [vmem:[#allocation2 + $0x38] sm:$0xff] %v1876_v32  ;;  %v1874_v38 = vadd.f32 %v1866_v28, %v1858_v57 }
 0x191   : > { %1878 = vst [vmem:[#allocation2] sm:$0xff] %v1870_v42 }
 0x192   : > { %1882 = vst [vmem:[#allocation2 + $0x20] sm:$0xff] %v1874_v38 }
 0x193   : > { %v1891_v45 = vld [vmem:[#allocation2 + $0x18] sm:$0xff]  ;;  %v1895_v54 = vld [vmem:[#allocation2 + $0x28] sm:$0xff] }
 0x194   : > { %v1889_v44 = vld [vmem:[#allocation2 + $0x30] sm:$0xff]  ;;  %v1953_v40 = vmul.f32 %v1891_v45, %v1891_v45  ;;  %v1957_v22 = vmul.f32 %v1895_v54, %v1895_v54 }
 0x195   : > { %v1951_v48 = vmul.f32 %v1889_v44, %v1889_v44  ;;  %v1893_v56 = vld [vmem:[#allocation2 + $0x8] sm:$0xff] }
 0x196   : > { %v1892_v0 = vld [vmem:[#allocation2 + $0x10] sm:$0xff]  ;;  %v1955_v55 = vmul.f32 %v1893_v56, %v1893_v56 }
 0x197   : > { %v2442_v52 = vpack.c.bf16 %v1892_v0, %v1891_v45  ;;  %v1954_v53 = vmul.f32 %v1892_v0, %v1892_v0  ;;  %v1896_v50 = vld [vmem:[#allocation2 + $0x38] sm:$0xff] }
 0x198   : > { %v1890_v5 = vld [vmem:[#allocation2] sm:$0xff]  ;;  %v2452_v6 = vpack.c.bf16 %v1896_v50, %v1895_v54  ;;  %v1958_v60 = vmul.f32 %v1896_v50, %v1896_v50 }
 0x199   : > { %v2437_v46 = vpack.c.bf16 %v1890_v5, %v1889_v44  ;;  %v1937_v15 = vadd.f32 %v1890_v5, %v1889_v44  ;;  %v1952_v49 = vmul.f32 %v1890_v5, %v1890_v5  ;;  %v1894_v4 = vld [vmem:[#allocation2 + $0x20] sm:$0xff]  ;;  %2454 = vst [vmem:[%s3073_s11 + $0x8] sm:$0xff] %v2442_v52  }
 0x19a   : > { %v2447_v13 = vpack.c.bf16 %v1894_v4, %v1893_v56  ;;  %2456 = vst [vmem:[%s3073_s11 + $0x18] sm:$0xff] %v2452_v6   ;;  %v1956_v25 = vmul.f32 %v1894_v4, %v1894_v4 }
 0x19b   : > { %2438 = vst [vmem:[%s3073_s11] sm:$0xff] %v2437_v46   ;;  %v1959_v26 = vadd.f32 %v1952_v49, %v1951_v48  ;;  %v1938_v20 = vadd.f32 %v1937_v15, %v1891_v45 }
 0x19c   : > { %2455 = vst [vmem:[%s3073_s11 + $0x10] sm:$0xff] %v2447_v13  }
 0x19d   : > { %v1939_v12 = vadd.f32 %v1938_v20, %v1892_v0  ;;  %v1960_v27 = vadd.f32 %v1959_v26, %v1953_v40 }
 0x19f   : > { %v1961_v21 = vadd.f32 %v1960_v27, %v1954_v53  ;;  %v1940_v3 = vadd.f32 %v1939_v12, %v1893_v56 }
 0x1a1   : > { %v1941_v33 = vadd.f32 %v1940_v3, %v1894_v4  ;;  %v1962_v62 = vadd.f32 %v1961_v21, %v1955_v55 }
 0x1a3   : > { %v1963_v10 = vadd.f32 %v1962_v62, %v1956_v25  ;;  %v1942_v14 = vadd.f32 %v1941_v33, %v1895_v54 }
 0x1a5   : > { %v1943_v58 = vadd.f32 %v1942_v14, %v1896_v50  ;;  %v1964_v7 = vadd.f32 %v1963_v10, %v1957_v22 }
 0x1a7   : > { %v1944_v11 = vrot.slane %v1943_v58, 4  ;;  %v1965_v19 = vadd.f32 %v1964_v7, %v1958_v60 }
 0x1a9   : > { %v1945_v61 = vadd.f32 %v1944_v11, %v1943_v58  ;;  %v1966_v43 = vrot.slane %v1965_v19, 4 }
 0x1ab   : > { %v1946_v9 = vrot.slane %v1945_v61, 2  ;;  %v1967_v16 = vadd.f32 %v1966_v43, %v1965_v19 }
 0x1ad   : > { %v1947_v23 = vadd.f32 %v1946_v9, %v1945_v61  ;;  %v1968_v29 = vrot.slane %v1967_v16, 2 }
 0x1af   : > { %v1948_v34 = vrot.slane %v1947_v23, 1  ;;  %v1969_v2 = vadd.f32 %v1968_v29, %v1967_v16 }
 0x1b1   : > { %v1949_v18 = vadd.f32 %v1948_v34, %v1947_v23  ;;  %v1970_v39 = vrot.slane %v1969_v2, 1 }
 0x1b3   : > { %1950 = vst [vmem:[%s275_s7] sm:$0x1] %v1949_v18  ;;  %v1971_v37 = vadd.f32 %v1970_v39, %v1969_v2 }
 0x1b5   : > { %1972 = vst [vmem:[%s282_s14] sm:$0x1] %v1971_v37 }
 0x1b6 PF: > { %s15_s21 = sadd.s32 1, %s2990_s21   ;;  %s3506_s15 = smov %s2978_s18 }
 0x1b7   : > { %p12_p10 = scmp.ge.s32.totalorder %s15_s21, 26   ;;  %s3507_s16 = smov %s2982_s19 }
 0x1b8   : > { %s3508_s17 = smov %s2986_s20  ;;  %s3509_s18 = smov %s3513_s22 }
 0x1b9   : > { %s3510_s19 = smov %s3517_s23  ;;  %s3511_s20 = smov %s3521_s24 }
 0x1ba   :  { %14 = sbr.rel (!%p12_p10) target bundleno = 4 (0x4), region = 99 }

// kernel: basic_block_forward.7
= control target key start
LH: loop header
LB: loop body
LE: loop exit
PB: predicated region body
PF: predicated region fallthrough
CT: control target
= control target key end

     0   :  { %s1351_s0 = inlined_call_operand.vmem [shape: bf16[512,128], index: 0, kind: input, shape index: {}]   ;;  %s1352_s2 = inlined_call_operand.vmem [shape: f32[1,128], index: 2, kind: input, shape index: {}]   ;;  %s1353_s3 = inlined_call_operand.vmem [shape: f32[1,128], index: 3, kind: input, shape index: {}]   ;;  %s1354_s1 = inlined_call_operand.vmem [shape: f32[512,128], index: 1, kind: input, shape index: {}]   ;;  %s1355_s4 = inlined_call_operand.vmem [shape: f32[512,128], index: 4, kind: output, shape index: {}]  }
   0x1   :  { %v550_v0 = vld [vmem:[%s1351_s0] sm:$0xff]   ;;  %v677_v4 = vld [vmem:[%s1351_s0 + $0x8] sm:$0xff]   ;;  %v678_v8 = vld [vmem:[%s1351_s0 + $0x10] sm:$0xff]  }
   0x2   :  { %v739_v1 = vld [vmem:[%s1352_s2] ss:$0 sm:$0xff]  ;;  %v551_v2 = vunpack.c.l.bf16 %v550_v0  ;;  %v552_v3 = vunpack.c.h.bf16 %v550_v0  ;;  %v555_v6 = vunpack.c.l.bf16 %v677_v4  ;;  %v556_v7 = vunpack.c.h.bf16 %v677_v4  ;;  %v679_v13 = vld [vmem:[%s1351_s0 + $0x18] sm:$0xff]   ;;  %v146_v15 = vld [vmem:[%s1354_s1 + $0x8] sm:$0xff] }
   0x3   :  { %v747_v5 = vld [vmem:[%s1353_s3] ss:$0 sm:$0xff]  ;;  %v559_v11 = vunpack.c.l.bf16 %v678_v8  ;;  %v560_v12 = vunpack.c.h.bf16 %v678_v8  ;;  %v563_v18 = vunpack.c.l.bf16 %v679_v13  ;;  %v564_v19 = vunpack.c.h.bf16 %v679_v13  ;;  %v147_v22 = vld [vmem:[%s1354_s1 + $0x10] sm:$0xff]  ;;  %v148_v23 = vld [vmem:[%s1354_s1 + $0x18] sm:$0xff] }
   0x4   :  { %v216_v9 = vmul.f32 %v551_v2, %v739_v1  ;;  %v217_v10 = vmul.f32 %v552_v3, %v739_v1  ;;  %v145_v14 = vld [vmem:[%s1354_s1] sm:$0xff]  ;;  %v218_v16 = vmul.f32 %v555_v6, %v739_v1  ;;  %v219_v17 = vmul.f32 %v556_v7, %v739_v1  ;;  %v150_v29 = vld [vmem:[%s1354_s1 + $0x28] sm:$0xff]  ;;  %v151_v36 = vld [vmem:[%s1354_s1 + $0x30] sm:$0xff] }
   0x5   :  { %v220_v24 = vmul.f32 %v559_v11, %v739_v1  ;;  %v221_v25 = vmul.f32 %v560_v12, %v739_v1  ;;  %v149_v28 = vld [vmem:[%s1354_s1 + $0x20] sm:$0xff]  ;;  %v222_v30 = vmul.f32 %v563_v18, %v739_v1  ;;  %v223_v31 = vmul.f32 %v564_v19, %v739_v1  ;;  %v152_v37 = vld [vmem:[%s1354_s1 + $0x38] sm:$0xff]  ;;  %v681_v47 = vld [vmem:[%s1351_s0 + $0x28] sm:$0xff]  }
   0x6   :  { %v287_v20 = vadd.f32 %v747_v5, %v216_v9  ;;  %v288_v21 = vadd.f32 %v747_v5, %v217_v10  ;;  %v289_v26 = vadd.f32 %v747_v5, %v218_v16  ;;  %v290_v27 = vadd.f32 %v747_v5, %v219_v17  ;;  %v680_v42 = vld [vmem:[%s1351_s0 + $0x20] sm:$0xff]   ;;  %v682_v52 = vld [vmem:[%s1351_s0 + $0x30] sm:$0xff]   ;;  %v683_v57 = vld [vmem:[%s1351_s0 + $0x38] sm:$0xff]  }
   0x7   :  { %v291_v34 = vadd.f32 %v747_v5, %v220_v24  ;;  %v292_v35 = vadd.f32 %v747_v5, %v221_v25  ;;  %v293_v40 = vadd.f32 %v747_v5, %v222_v30  ;;  %v294_v41 = vadd.f32 %v747_v5, %v223_v31  ;;  %v153_v3 = vld [vmem:[%s1354_s1 + $0x40] sm:$0xff]  ;;  %v154_v4 = vld [vmem:[%s1354_s1 + $0x48] sm:$0xff]  ;;  %v155_v12 = vld [vmem:[%s1354_s1 + $0x50] sm:$0xff] }
   0x8   :  { %v351_v32 = vadd.f32 %v287_v20, %v145_v14  ;;  %v352_v33 = vadd.f32 %v288_v21, %v146_v15  ;;  %v353_v38 = vadd.f32 %v289_v26, %v147_v22  ;;  %v354_v39 = vadd.f32 %v290_v27, %v148_v23  ;;  %v156_v13 = vld [vmem:[%s1354_s1 + $0x58] sm:$0xff]  ;;  %v157_v18 = vld [vmem:[%s1354_s1 + $0x60] sm:$0xff]  ;;  %v158_v19 = vld [vmem:[%s1354_s1 + $0x68] sm:$0xff] }
   0x9   :  { %v355_v45 = vadd.f32 %v291_v34, %v149_v28  ;;  %v356_v46 = vadd.f32 %v292_v35, %v150_v29  ;;  %v357_v50 = vadd.f32 %v293_v40, %v151_v36  ;;  %v358_v51 = vadd.f32 %v294_v41, %v152_v37  ;;  %v159_v26 = vld [vmem:[%s1354_s1 + $0x70] sm:$0xff]  ;;  %v160_v27 = vld [vmem:[%s1354_s1 + $0x78] sm:$0xff]  ;;  %v685_v37 = vld [vmem:[%s1351_s0 + $0x48] sm:$0xff]  }
   0xa   :  { %v415_v43 = vmax.f32 %v351_v32, 0.0  ;;  %v416_v44 = vmax.f32 %v352_v33, 0.0  ;;  %v417_v48 = vmax.f32 %v353_v38, 0.0  ;;  %v418_v49 = vmax.f32 %v354_v39, 0.0  ;;  %v684_v32 = vld [vmem:[%s1351_s0 + $0x40] sm:$0xff]  }
   0xb   :  { %v419_v53 = vmax.f32 %v355_v45, 0.0  ;;  %v420_v54 = vmax.f32 %v356_v46, 0.0  ;;  %v567_v55 = vunpack.c.l.bf16 %v680_v42  ;;  %v568_v56 = vunpack.c.h.bf16 %v680_v42  ;;  %v686_v42 = vld [vmem:[%s1351_s0 + $0x50] sm:$0xff]  }
   0xc   :  { %479 = vst [vmem:[%s1355_s4] sm:$0xff] %v415_v43  ;;  %480 = vst [vmem:[%s1355_s4 + $0x8] sm:$0xff] %v416_v44  ;;  %v421_v58 = vmax.f32 %v357_v50, 0.0  ;;  %v422_v59 = vmax.f32 %v358_v51, 0.0  ;;  %v571_v60 = vunpack.c.l.bf16 %v681_v47  ;;  %v572_v61 = vunpack.c.h.bf16 %v681_v47  ;;  %v687_v47 = vld [vmem:[%s1351_s0 + $0x58] sm:$0xff]  }
   0xd   :  { %481 = vst [vmem:[%s1355_s4 + $0x10] sm:$0xff] %v417_v48  ;;  %482 = vst [vmem:[%s1355_s4 + $0x18] sm:$0xff] %v418_v49  ;;  %v224_v62 = vmul.f32 %v567_v55, %v739_v1  ;;  %v225_v63 = vmul.f32 %v568_v56, %v739_v1  ;;  %v575_v0 = vunpack.c.l.bf16 %v682_v52  ;;  %v576_v2 = vunpack.c.h.bf16 %v682_v52  ;;  %v161_v56 = vld [vmem:[%s1354_s1 + $0x80] sm:$0xff] }
   0xe   :  { %483 = vst [vmem:[%s1355_s4 + $0x20] sm:$0xff] %v419_v53  ;;  %484 = vst [vmem:[%s1355_s4 + $0x28] sm:$0xff] %v420_v54  ;;  %v226_v6 = vmul.f32 %v571_v60, %v739_v1  ;;  %v227_v7 = vmul.f32 %v572_v61, %v739_v1  ;;  %v579_v8 = vunpack.c.l.bf16 %v683_v57  ;;  %v580_v9 = vunpack.c.h.bf16 %v683_v57  ;;  %v162_v57 = vld [vmem:[%s1354_s1 + $0x88] sm:$0xff] }
   0xf   :  { %485 = vst [vmem:[%s1355_s4 + $0x30] sm:$0xff] %v421_v58  ;;  %486 = vst [vmem:[%s1355_s4 + $0x38] sm:$0xff] %v422_v59  ;;  %v295_v10 = vadd.f32 %v747_v5, %v224_v62  ;;  %v296_v11 = vadd.f32 %v747_v5, %v225_v63  ;;  %v228_v14 = vmul.f32 %v575_v0, %v739_v1  ;;  %v583_v45 = vunpack.c.l.bf16 %v684_v32  ;;  %v163_v0 = vld [vmem:[%s1354_s1 + $0x90] sm:$0xff] }
  0x10   :  { %v229_v15 = vmul.f32 %v576_v2, %v739_v1  ;;  %v297_v16 = vadd.f32 %v747_v5, %v226_v6  ;;  %v298_v17 = vadd.f32 %v747_v5, %v227_v7  ;;  %v230_v20 = vmul.f32 %v579_v8, %v739_v1  ;;  %v164_v2 = vld [vmem:[%s1354_s1 + $0x98] sm:$0xff]  ;;  %v165_v8 = vld [vmem:[%s1354_s1 + $0xa0] sm:$0xff] }
  0x11   :  { %v231_v21 = vmul.f32 %v580_v9, %v739_v1  ;;  %v359_v22 = vadd.f32 %v295_v10, %v153_v3  ;;  %v360_v23 = vadd.f32 %v296_v11, %v154_v4  ;;  %v299_v24 = vadd.f32 %v747_v5, %v228_v14  ;;  %v166_v9 = vld [vmem:[%s1354_s1 + $0xa8] sm:$0xff] }
  0x12   :  { %v300_v25 = vadd.f32 %v747_v5, %v229_v15  ;;  %v361_v28 = vadd.f32 %v297_v16, %v155_v12  ;;  %v362_v29 = vadd.f32 %v298_v17, %v156_v13  ;;  %v301_v30 = vadd.f32 %v747_v5, %v230_v20  ;;  %v167_v16 = vld [vmem:[%s1354_s1 + $0xb0] sm:$0xff]  ;;  %v168_v17 = vld [vmem:[%s1354_s1 + $0xb8] sm:$0xff] }
  0x13   :  { %v302_v31 = vadd.f32 %v747_v5, %v231_v21  ;;  %v423_v33 = vmax.f32 %v359_v22, 0.0  ;;  %v424_v34 = vmax.f32 %v360_v23, 0.0  ;;  %v363_v35 = vadd.f32 %v299_v24, %v157_v18  ;;  %v688_v22 = vld [vmem:[%s1351_s0 + $0x60] sm:$0xff]  }
  0x14   :  { %v364_v36 = vadd.f32 %v300_v25, %v158_v19  ;;  %v425_v38 = vmax.f32 %v361_v28, 0.0  ;;  %v426_v39 = vmax.f32 %v362_v29, 0.0  ;;  %v365_v40 = vadd.f32 %v301_v30, %v159_v26 }
  0x15   :  { %v366_v41 = vadd.f32 %v302_v31, %v160_v27  ;;  %487 = vst [vmem:[%s1355_s4 + $0x40] sm:$0xff] %v423_v33  ;;  %488 = vst [vmem:[%s1355_s4 + $0x48] sm:$0xff] %v424_v34  ;;  %v427_v43 = vmax.f32 %v363_v35, 0.0  ;;  %v584_v46 = vunpack.c.h.bf16 %v684_v32  ;;  %v587_v50 = vunpack.c.l.bf16 %v685_v37  ;;  %v689_v27 = vld [vmem:[%s1351_s0 + $0x68] sm:$0xff]   ;;  %v690_v32 = vld [vmem:[%s1351_s0 + $0x70] sm:$0xff]  }
  0x16   :  { %v428_v44 = vmax.f32 %v364_v36, 0.0  ;;  %489 = vst [vmem:[%s1355_s4 + $0x50] sm:$0xff] %v425_v38  ;;  %490 = vst [vmem:[%s1355_s4 + $0x58] sm:$0xff] %v426_v39  ;;  %v429_v48 = vmax.f32 %v365_v40, 0.0  ;;  %v588_v51 = vunpack.c.h.bf16 %v685_v37  ;;  %v232_v52 = vmul.f32 %v583_v45, %v739_v1  ;;  %v691_v37 = vld [vmem:[%s1351_s0 + $0x78] sm:$0xff]  }
  0x17   :  { %v430_v49 = vmax.f32 %v366_v41, 0.0  ;;  %491 = vst [vmem:[%s1355_s4 + $0x60] sm:$0xff] %v427_v43  ;;  %v233_v53 = vmul.f32 %v584_v46, %v739_v1  ;;  %v591_v54 = vunpack.c.l.bf16 %v686_v42  ;;  %v592_v55 = vunpack.c.h.bf16 %v686_v42  ;;  %v169_v46 = vld [vmem:[%s1354_s1 + $0xc0] sm:$0xff] }
  0x18   :  { %492 = vst [vmem:[%s1355_s4 + $0x68] sm:$0xff] %v428_v44  ;;  %493 = vst [vmem:[%s1355_s4 + $0x70] sm:$0xff] %v429_v48  ;;  %v234_v58 = vmul.f32 %v587_v50, %v739_v1  ;;  %v235_v59 = vmul.f32 %v588_v51, %v739_v1  ;;  %v595_v60 = vunpack.c.l.bf16 %v687_v47  ;;  %v596_v61 = vunpack.c.h.bf16 %v687_v47  ;;  %v170_v47 = vld [vmem:[%s1354_s1 + $0xc8] sm:$0xff] }
  0x19   :  { %494 = vst [vmem:[%s1355_s4 + $0x78] sm:$0xff] %v430_v49  ;;  %v303_v62 = vadd.f32 %v747_v5, %v232_v52  ;;  %v304_v63 = vadd.f32 %v747_v5, %v233_v53  ;;  %v236_v3 = vmul.f32 %v591_v54, %v739_v1  ;;  %v237_v4 = vmul.f32 %v592_v55, %v739_v1  ;;  %v171_v54 = vld [vmem:[%s1354_s1 + $0xd0] sm:$0xff]  ;;  %v172_v55 = vld [vmem:[%s1354_s1 + $0xd8] sm:$0xff] }
  0x1a   :  { %v305_v6 = vadd.f32 %v747_v5, %v234_v58  ;;  %v306_v7 = vadd.f32 %v747_v5, %v235_v59  ;;  %v238_v10 = vmul.f32 %v595_v60, %v739_v1  ;;  %v239_v11 = vmul.f32 %v596_v61, %v739_v1  ;;  %v173_v60 = vld [vmem:[%s1354_s1 + $0xe0] sm:$0xff]  ;;  %v174_v61 = vld [vmem:[%s1354_s1 + $0xe8] sm:$0xff] }
  0x1b   :  { %v367_v12 = vadd.f32 %v303_v62, %v161_v56  ;;  %v368_v13 = vadd.f32 %v304_v63, %v162_v57  ;;  %v307_v14 = vadd.f32 %v747_v5, %v236_v3  ;;  %v308_v15 = vadd.f32 %v747_v5, %v237_v4 }
  0x1c   :  { %v369_v18 = vadd.f32 %v305_v6, %v163_v0  ;;  %v370_v19 = vadd.f32 %v306_v7, %v164_v2  ;;  %v309_v20 = vadd.f32 %v747_v5, %v238_v10  ;;  %v310_v21 = vadd.f32 %v747_v5, %v239_v11  ;;  %v175_v6 = vld [vmem:[%s1354_s1 + $0xf0] sm:$0xff]  ;;  %v176_v7 = vld [vmem:[%s1354_s1 + $0xf8] sm:$0xff] }
  0x1d   :  { %v431_v23 = vmax.f32 %v367_v12, 0.0  ;;  %v432_v24 = vmax.f32 %v368_v13, 0.0  ;;  %v371_v25 = vadd.f32 %v307_v14, %v165_v8  ;;  %v372_v26 = vadd.f32 %v308_v15, %v166_v9  ;;  %v692_v12 = vld [vmem:[%s1351_s0 + $0x80] sm:$0xff]  }
  0x1e   :  { %v433_v28 = vmax.f32 %v369_v18, 0.0  ;;  %v434_v29 = vmax.f32 %v370_v19, 0.0  ;;  %v373_v30 = vadd.f32 %v309_v20, %v167_v16  ;;  %v374_v31 = vadd.f32 %v310_v21, %v168_v17  ;;  %v693_v17 = vld [vmem:[%s1351_s0 + $0x88] sm:$0xff]  }
  0x1f   :  { %495 = vst [vmem:[%s1355_s4 + $0x80] sm:$0xff] %v431_v23  ;;  %496 = vst [vmem:[%s1355_s4 + $0x88] sm:$0xff] %v432_v24  ;;  %v435_v33 = vmax.f32 %v371_v25, 0.0  ;;  %v436_v34 = vmax.f32 %v372_v26, 0.0  ;;  %v599_v35 = vunpack.c.l.bf16 %v688_v22  ;;  %v600_v36 = vunpack.c.h.bf16 %v688_v22  ;;  %v694_v22 = vld [vmem:[%s1351_s0 + $0x90] sm:$0xff]  }
  0x20   :  { %497 = vst [vmem:[%s1355_s4 + $0x90] sm:$0xff] %v433_v28  ;;  %498 = vst [vmem:[%s1355_s4 + $0x98] sm:$0xff] %v434_v29  ;;  %v437_v38 = vmax.f32 %v373_v30, 0.0  ;;  %v438_v39 = vmax.f32 %v374_v31, 0.0  ;;  %v603_v40 = vunpack.c.l.bf16 %v689_v27  ;;  %v604_v41 = vunpack.c.h.bf16 %v689_v27  ;;  %v695_v27 = vld [vmem:[%s1351_s0 + $0x98] sm:$0xff]  }
  0x21   :  { %499 = vst [vmem:[%s1355_s4 + $0xa0] sm:$0xff] %v435_v33  ;;  %500 = vst [vmem:[%s1355_s4 + $0xa8] sm:$0xff] %v436_v34  ;;  %v240_v42 = vmul.f32 %v599_v35, %v739_v1  ;;  %v241_v43 = vmul.f32 %v600_v36, %v739_v1  ;;  %v607_v44 = vunpack.c.l.bf16 %v690_v32  ;;  %v608_v45 = vunpack.c.h.bf16 %v690_v32  ;;  %v177_v36 = vld [vmem:[%s1354_s1 + $0x100] sm:$0xff] }
  0x22   :  { %501 = vst [vmem:[%s1355_s4 + $0xb0] sm:$0xff] %v437_v38  ;;  %502 = vst [vmem:[%s1355_s4 + $0xb8] sm:$0xff] %v438_v39  ;;  %v242_v48 = vmul.f32 %v603_v40, %v739_v1  ;;  %v243_v49 = vmul.f32 %v604_v41, %v739_v1  ;;  %v611_v50 = vunpack.c.l.bf16 %v691_v37  ;;  %v612_v51 = vunpack.c.h.bf16 %v691_v37  ;;  %v178_v37 = vld [vmem:[%s1354_s1 + $0x108] sm:$0xff] }
  0x23   :  { %v311_v52 = vadd.f32 %v747_v5, %v240_v42  ;;  %v312_v53 = vadd.f32 %v747_v5, %v241_v43  ;;  %v244_v56 = vmul.f32 %v607_v44, %v739_v1  ;;  %v245_v57 = vmul.f32 %v608_v45, %v739_v1  ;;  %v179_v44 = vld [vmem:[%s1354_s1 + $0x110] sm:$0xff]  ;;  %v180_v45 = vld [vmem:[%s1354_s1 + $0x118] sm:$0xff] }
  0x24   :  { %v313_v58 = vadd.f32 %v747_v5, %v242_v48  ;;  %v314_v59 = vadd.f32 %v747_v5, %v243_v49  ;;  %v246_v62 = vmul.f32 %v611_v50, %v739_v1  ;;  %v247_v63 = vmul.f32 %v612_v51, %v739_v1  ;;  %v181_v50 = vld [vmem:[%s1354_s1 + $0x120] sm:$0xff]  ;;  %v182_v51 = vld [vmem:[%s1354_s1 + $0x128] sm:$0xff] }
  0x25   :  { %v375_v0 = vadd.f32 %v311_v52, %v169_v46  ;;  %v376_v2 = vadd.f32 %v312_v53, %v170_v47  ;;  %v315_v3 = vadd.f32 %v747_v5, %v244_v56  ;;  %v316_v4 = vadd.f32 %v747_v5, %v245_v57 }
  0x26   :  { %v377_v8 = vadd.f32 %v313_v58, %v171_v54  ;;  %v378_v9 = vadd.f32 %v314_v59, %v172_v55  ;;  %v317_v10 = vadd.f32 %v747_v5, %v246_v62  ;;  %v318_v11 = vadd.f32 %v747_v5, %v247_v63  ;;  %v183_v58 = vld [vmem:[%s1354_s1 + $0x130] sm:$0xff]  ;;  %v184_v59 = vld [vmem:[%s1354_s1 + $0x138] sm:$0xff] }
  0x27   :  { %v439_v13 = vmax.f32 %v375_v0, 0.0  ;;  %v440_v14 = vmax.f32 %v376_v2, 0.0  ;;  %v379_v15 = vadd.f32 %v315_v3, %v173_v60  ;;  %v380_v16 = vadd.f32 %v316_v4, %v174_v61  ;;  %v696_v0 = vld [vmem:[%s1351_s0 + $0xa0] sm:$0xff]  }
  0x28   :  { %v441_v18 = vmax.f32 %v377_v8, 0.0  ;;  %v442_v19 = vmax.f32 %v378_v9, 0.0  ;;  %v381_v20 = vadd.f32 %v317_v10, %v175_v6  ;;  %v382_v21 = vadd.f32 %v318_v11, %v176_v7  ;;  %v697_v7 = vld [vmem:[%s1351_s0 + $0xa8] sm:$0xff]  }
  0x29   :  { %503 = vst [vmem:[%s1355_s4 + $0xc0] sm:$0xff] %v439_v13  ;;  %504 = vst [vmem:[%s1355_s4 + $0xc8] sm:$0xff] %v440_v14  ;;  %v443_v23 = vmax.f32 %v379_v15, 0.0  ;;  %v444_v24 = vmax.f32 %v380_v16, 0.0  ;;  %v615_v25 = vunpack.c.l.bf16 %v692_v12  ;;  %v616_v26 = vunpack.c.h.bf16 %v692_v12  ;;  %v698_v12 = vld [vmem:[%s1351_s0 + $0xb0] sm:$0xff]  }
  0x2a   :  { %505 = vst [vmem:[%s1355_s4 + $0xd0] sm:$0xff] %v441_v18  ;;  %506 = vst [vmem:[%s1355_s4 + $0xd8] sm:$0xff] %v442_v19  ;;  %v445_v28 = vmax.f32 %v381_v20, 0.0  ;;  %v446_v29 = vmax.f32 %v382_v21, 0.0  ;;  %v619_v30 = vunpack.c.l.bf16 %v693_v17  ;;  %v620_v31 = vunpack.c.h.bf16 %v693_v17  ;;  %v699_v17 = vld [vmem:[%s1351_s0 + $0xb8] sm:$0xff]  }
  0x2b   :  { %507 = vst [vmem:[%s1355_s4 + $0xe0] sm:$0xff] %v443_v23  ;;  %508 = vst [vmem:[%s1355_s4 + $0xe8] sm:$0xff] %v444_v24  ;;  %v248_v32 = vmul.f32 %v615_v25, %v739_v1  ;;  %v249_v33 = vmul.f32 %v616_v26, %v739_v1  ;;  %v623_v34 = vunpack.c.l.bf16 %v694_v22  ;;  %v624_v35 = vunpack.c.h.bf16 %v694_v22  ;;  %v185_v26 = vld [vmem:[%s1354_s1 + $0x140] sm:$0xff] }
  0x2c   :  { %509 = vst [vmem:[%s1355_s4 + $0xf0] sm:$0xff] %v445_v28  ;;  %510 = vst [vmem:[%s1355_s4 + $0xf8] sm:$0xff] %v446_v29  ;;  %v250_v38 = vmul.f32 %v619_v30, %v739_v1  ;;  %v251_v39 = vmul.f32 %v620_v31, %v739_v1  ;;  %v627_v40 = vunpack.c.l.bf16 %v695_v27  ;;  %v628_v41 = vunpack.c.h.bf16 %v695_v27  ;;  %v186_v27 = vld [vmem:[%s1354_s1 + $0x148] sm:$0xff] }
  0x2d   :  { %v319_v42 = vadd.f32 %v747_v5, %v248_v32  ;;  %v320_v43 = vadd.f32 %v747_v5, %v249_v33  ;;  %v252_v46 = vmul.f32 %v623_v34, %v739_v1  ;;  %v253_v47 = vmul.f32 %v624_v35, %v739_v1  ;;  %v187_v34 = vld [vmem:[%s1354_s1 + $0x150] sm:$0xff]  ;;  %v188_v35 = vld [vmem:[%s1354_s1 + $0x158] sm:$0xff] }
  0x2e   :  { %v321_v48 = vadd.f32 %v747_v5, %v250_v38  ;;  %v322_v49 = vadd.f32 %v747_v5, %v251_v39  ;;  %v254_v52 = vmul.f32 %v627_v40, %v739_v1  ;;  %v255_v53 = vmul.f32 %v628_v41, %v739_v1  ;;  %v189_v40 = vld [vmem:[%s1354_s1 + $0x160] sm:$0xff]  ;;  %v190_v41 = vld [vmem:[%s1354_s1 + $0x168] sm:$0xff] }
  0x2f   :  { %v383_v54 = vadd.f32 %v319_v42, %v177_v36  ;;  %v384_v55 = vadd.f32 %v320_v43, %v178_v37  ;;  %v323_v56 = vadd.f32 %v747_v5, %v252_v46  ;;  %v324_v57 = vadd.f32 %v747_v5, %v253_v47 }
  0x30   :  { %v385_v60 = vadd.f32 %v321_v48, %v179_v44  ;;  %v386_v61 = vadd.f32 %v322_v49, %v180_v45  ;;  %v325_v62 = vadd.f32 %v747_v5, %v254_v52  ;;  %v326_v63 = vadd.f32 %v747_v5, %v255_v53  ;;  %v191_v48 = vld [vmem:[%s1354_s1 + $0x170] sm:$0xff]  ;;  %v192_v49 = vld [vmem:[%s1354_s1 + $0x178] sm:$0xff] }
  0x31   :  { %v447_v2 = vmax.f32 %v383_v54, 0.0  ;;  %v448_v3 = vmax.f32 %v384_v55, 0.0  ;;  %v387_v4 = vadd.f32 %v323_v56, %v181_v50  ;;  %v388_v6 = vadd.f32 %v324_v57, %v182_v51  ;;  %v700_v54 = vld [vmem:[%s1351_s0 + $0xc0] sm:$0xff]  }
  0x32   :  { %v449_v8 = vmax.f32 %v385_v60, 0.0  ;;  %v450_v9 = vmax.f32 %v386_v61, 0.0  ;;  %v389_v10 = vadd.f32 %v325_v62, %v183_v58  ;;  %v390_v11 = vadd.f32 %v326_v63, %v184_v59  ;;  %v701_v59 = vld [vmem:[%s1351_s0 + $0xc8] sm:$0xff]  }
  0x33   :  { %511 = vst [vmem:[%s1355_s4 + $0x100] sm:$0xff] %v447_v2  ;;  %512 = vst [vmem:[%s1355_s4 + $0x108] sm:$0xff] %v448_v3  ;;  %v451_v13 = vmax.f32 %v387_v4, 0.0  ;;  %v452_v14 = vmax.f32 %v388_v6, 0.0  ;;  %v631_v15 = vunpack.c.l.bf16 %v696_v0  ;;  %v632_v16 = vunpack.c.h.bf16 %v696_v0  ;;  %v702_v0 = vld [vmem:[%s1351_s0 + $0xd0] sm:$0xff]  }
  0x34   :  { %513 = vst [vmem:[%s1355_s4 + $0x110] sm:$0xff] %v449_v8  ;;  %514 = vst [vmem:[%s1355_s4 + $0x118] sm:$0xff] %v450_v9  ;;  %v453_v18 = vmax.f32 %v389_v10, 0.0  ;;  %v454_v19 = vmax.f32 %v390_v11, 0.0  ;;  %v635_v20 = vunpack.c.l.bf16 %v697_v7  ;;  %v636_v21 = vunpack.c.h.bf16 %v697_v7  ;;  %v703_v7 = vld [vmem:[%s1351_s0 + $0xd8] sm:$0xff]  }
  0x35   :  { %515 = vst [vmem:[%s1355_s4 + $0x120] sm:$0xff] %v451_v13  ;;  %516 = vst [vmem:[%s1355_s4 + $0x128] sm:$0xff] %v452_v14  ;;  %v256_v22 = vmul.f32 %v631_v15, %v739_v1  ;;  %v257_v23 = vmul.f32 %v632_v16, %v739_v1  ;;  %v639_v24 = vunpack.c.l.bf16 %v698_v12  ;;  %v640_v25 = vunpack.c.h.bf16 %v698_v12  ;;  %v193_v16 = vld [vmem:[%s1354_s1 + $0x180] sm:$0xff] }
  0x36   :  { %517 = vst [vmem:[%s1355_s4 + $0x130] sm:$0xff] %v453_v18  ;;  %518 = vst [vmem:[%s1355_s4 + $0x138] sm:$0xff] %v454_v19  ;;  %v258_v28 = vmul.f32 %v635_v20, %v739_v1  ;;  %v259_v29 = vmul.f32 %v636_v21, %v739_v1  ;;  %v643_v30 = vunpack.c.l.bf16 %v699_v17  ;;  %v644_v31 = vunpack.c.h.bf16 %v699_v17  ;;  %v194_v17 = vld [vmem:[%s1354_s1 + $0x188] sm:$0xff] }
  0x37   :  { %v327_v32 = vadd.f32 %v747_v5, %v256_v22  ;;  %v328_v33 = vadd.f32 %v747_v5, %v257_v23  ;;  %v260_v36 = vmul.f32 %v639_v24, %v739_v1  ;;  %v261_v37 = vmul.f32 %v640_v25, %v739_v1  ;;  %v195_v24 = vld [vmem:[%s1354_s1 + $0x190] sm:$0xff]  ;;  %v196_v25 = vld [vmem:[%s1354_s1 + $0x198] sm:$0xff] }
  0x38   :  { %v329_v38 = vadd.f32 %v747_v5, %v258_v28  ;;  %v330_v39 = vadd.f32 %v747_v5, %v259_v29  ;;  %v262_v42 = vmul.f32 %v643_v30, %v739_v1  ;;  %v263_v43 = vmul.f32 %v644_v31, %v739_v1  ;;  %v197_v30 = vld [vmem:[%s1354_s1 + $0x1a0] sm:$0xff]  ;;  %v198_v31 = vld [vmem:[%s1354_s1 + $0x1a8] sm:$0xff] }
  0x39   :  { %v391_v44 = vadd.f32 %v327_v32, %v185_v26  ;;  %v392_v45 = vadd.f32 %v328_v33, %v186_v27  ;;  %v331_v46 = vadd.f32 %v747_v5, %v260_v36  ;;  %v332_v47 = vadd.f32 %v747_v5, %v261_v37 }
  0x3a   :  { %v393_v50 = vadd.f32 %v329_v38, %v187_v34  ;;  %v394_v51 = vadd.f32 %v330_v39, %v188_v35  ;;  %v333_v52 = vadd.f32 %v747_v5, %v262_v42  ;;  %v334_v53 = vadd.f32 %v747_v5, %v263_v43  ;;  %v199_v38 = vld [vmem:[%s1354_s1 + $0x1b0] sm:$0xff]  ;;  %v200_v39 = vld [vmem:[%s1354_s1 + $0x1b8] sm:$0xff] }
  0x3b   :  { %v455_v55 = vmax.f32 %v391_v44, 0.0  ;;  %v456_v56 = vmax.f32 %v392_v45, 0.0  ;;  %v395_v57 = vadd.f32 %v331_v46, %v189_v40  ;;  %v396_v58 = vadd.f32 %v332_v47, %v190_v41  ;;  %v704_v44 = vld [vmem:[%s1351_s0 + $0xe0] sm:$0xff]  }
  0x3c   :  { %v457_v60 = vmax.f32 %v393_v50, 0.0  ;;  %v458_v61 = vmax.f32 %v394_v51, 0.0  ;;  %v397_v62 = vadd.f32 %v333_v52, %v191_v48  ;;  %v398_v63 = vadd.f32 %v334_v53, %v192_v49  ;;  %v705_v49 = vld [vmem:[%s1351_s0 + $0xe8] sm:$0xff]  }
  0x3d   :  { %519 = vst [vmem:[%s1355_s4 + $0x140] sm:$0xff] %v455_v55  ;;  %520 = vst [vmem:[%s1355_s4 + $0x148] sm:$0xff] %v456_v56  ;;  %v459_v2 = vmax.f32 %v395_v57, 0.0  ;;  %v460_v3 = vmax.f32 %v396_v58, 0.0  ;;  %v647_v4 = vunpack.c.l.bf16 %v700_v54  ;;  %v648_v6 = vunpack.c.h.bf16 %v700_v54  ;;  %v706_v54 = vld [vmem:[%s1351_s0 + $0xf0] sm:$0xff]  }
  0x3e   :  { %521 = vst [vmem:[%s1355_s4 + $0x150] sm:$0xff] %v457_v60  ;;  %522 = vst [vmem:[%s1355_s4 + $0x158] sm:$0xff] %v458_v61  ;;  %v461_v8 = vmax.f32 %v397_v62, 0.0  ;;  %v462_v9 = vmax.f32 %v398_v63, 0.0  ;;  %v651_v10 = vunpack.c.l.bf16 %v701_v59  ;;  %v652_v11 = vunpack.c.h.bf16 %v701_v59  ;;  %v707_v59 = vld [vmem:[%s1351_s0 + $0xf8] sm:$0xff]  }
  0x3f   :  { %523 = vst [vmem:[%s1355_s4 + $0x160] sm:$0xff] %v459_v2  ;;  %524 = vst [vmem:[%s1355_s4 + $0x168] sm:$0xff] %v460_v3  ;;  %v264_v12 = vmul.f32 %v647_v4, %v739_v1  ;;  %v265_v13 = vmul.f32 %v648_v6, %v739_v1  ;;  %v655_v14 = vunpack.c.l.bf16 %v702_v0  ;;  %v656_v15 = vunpack.c.h.bf16 %v702_v0  ;;  %v201_v6 = vld [vmem:[%s1354_s1 + $0x1c0] sm:$0xff] }
  0x40   :  { %525 = vst [vmem:[%s1355_s4 + $0x170] sm:$0xff] %v461_v8  ;;  %526 = vst [vmem:[%s1355_s4 + $0x178] sm:$0xff] %v462_v9  ;;  %v266_v18 = vmul.f32 %v651_v10, %v739_v1  ;;  %v267_v19 = vmul.f32 %v652_v11, %v739_v1  ;;  %v659_v20 = vunpack.c.l.bf16 %v703_v7  ;;  %v660_v21 = vunpack.c.h.bf16 %v703_v7  ;;  %v202_v7 = vld [vmem:[%s1354_s1 + $0x1c8] sm:$0xff] }
  0x41   :  { %v335_v22 = vadd.f32 %v747_v5, %v264_v12  ;;  %v336_v23 = vadd.f32 %v747_v5, %v265_v13  ;;  %v268_v26 = vmul.f32 %v655_v14, %v739_v1  ;;  %v269_v27 = vmul.f32 %v656_v15, %v739_v1  ;;  %v203_v14 = vld [vmem:[%s1354_s1 + $0x1d0] sm:$0xff]  ;;  %v204_v15 = vld [vmem:[%s1354_s1 + $0x1d8] sm:$0xff] }
  0x42   :  { %v337_v28 = vadd.f32 %v747_v5, %v266_v18  ;;  %v338_v29 = vadd.f32 %v747_v5, %v267_v19  ;;  %v270_v32 = vmul.f32 %v659_v20, %v739_v1  ;;  %v271_v33 = vmul.f32 %v660_v21, %v739_v1  ;;  %v205_v20 = vld [vmem:[%s1354_s1 + $0x1e0] sm:$0xff]  ;;  %v206_v21 = vld [vmem:[%s1354_s1 + $0x1e8] sm:$0xff] }
  0x43   :  { %v399_v34 = vadd.f32 %v335_v22, %v193_v16  ;;  %v400_v35 = vadd.f32 %v336_v23, %v194_v17  ;;  %v339_v36 = vadd.f32 %v747_v5, %v268_v26  ;;  %v340_v37 = vadd.f32 %v747_v5, %v269_v27 }
  0x44   :  { %v401_v40 = vadd.f32 %v337_v28, %v195_v24  ;;  %v402_v41 = vadd.f32 %v338_v29, %v196_v25  ;;  %v341_v42 = vadd.f32 %v747_v5, %v270_v32  ;;  %v342_v43 = vadd.f32 %v747_v5, %v271_v33  ;;  %v207_v28 = vld [vmem:[%s1354_s1 + $0x1f0] sm:$0xff]  ;;  %v208_v29 = vld [vmem:[%s1354_s1 + $0x1f8] sm:$0xff] }
  0x45   :  { %v463_v45 = vmax.f32 %v399_v34, 0.0  ;;  %v464_v46 = vmax.f32 %v400_v35, 0.0  ;;  %v403_v47 = vadd.f32 %v339_v36, %v197_v30  ;;  %v404_v48 = vadd.f32 %v340_v37, %v198_v31 }
  0x46   :  { %v465_v50 = vmax.f32 %v401_v40, 0.0  ;;  %v466_v51 = vmax.f32 %v402_v41, 0.0  ;;  %v405_v52 = vadd.f32 %v341_v42, %v199_v38  ;;  %v406_v53 = vadd.f32 %v342_v43, %v200_v39 }
  0x47   :  { %527 = vst [vmem:[%s1355_s4 + $0x180] sm:$0xff] %v463_v45  ;;  %528 = vst [vmem:[%s1355_s4 + $0x188] sm:$0xff] %v464_v46  ;;  %v467_v55 = vmax.f32 %v403_v47, 0.0  ;;  %v468_v56 = vmax.f32 %v404_v48, 0.0  ;;  %v663_v57 = vunpack.c.l.bf16 %v704_v44  ;;  %v664_v58 = vunpack.c.h.bf16 %v704_v44 }
  0x48   :  { %529 = vst [vmem:[%s1355_s4 + $0x190] sm:$0xff] %v465_v50  ;;  %530 = vst [vmem:[%s1355_s4 + $0x198] sm:$0xff] %v466_v51  ;;  %v469_v60 = vmax.f32 %v405_v52, 0.0  ;;  %v470_v61 = vmax.f32 %v406_v53, 0.0  ;;  %v667_v62 = vunpack.c.l.bf16 %v705_v49  ;;  %v668_v63 = vunpack.c.h.bf16 %v705_v49 }
  0x49   :  { %531 = vst [vmem:[%s1355_s4 + $0x1a0] sm:$0xff] %v467_v55  ;;  %532 = vst [vmem:[%s1355_s4 + $0x1a8] sm:$0xff] %v468_v56  ;;  %v272_v0 = vmul.f32 %v663_v57, %v739_v1  ;;  %v273_v2 = vmul.f32 %v664_v58, %v739_v1  ;;  %v671_v3 = vunpack.c.l.bf16 %v706_v54  ;;  %v672_v4 = vunpack.c.h.bf16 %v706_v54 }
  0x4a   :  { %533 = vst [vmem:[%s1355_s4 + $0x1b0] sm:$0xff] %v469_v60  ;;  %534 = vst [vmem:[%s1355_s4 + $0x1b8] sm:$0xff] %v470_v61  ;;  %v274_v8 = vmul.f32 %v667_v62, %v739_v1  ;;  %v275_v9 = vmul.f32 %v668_v63, %v739_v1  ;;  %v675_v10 = vunpack.c.l.bf16 %v707_v59  ;;  %v676_v11 = vunpack.c.h.bf16 %v707_v59 }
  0x4b   :  { %v343_v12 = vadd.f32 %v747_v5, %v272_v0  ;;  %v344_v13 = vadd.f32 %v747_v5, %v273_v2  ;;  %v276_v16 = vmul.f32 %v671_v3, %v739_v1  ;;  %v277_v17 = vmul.f32 %v672_v4, %v739_v1 }
  0x4c   :  { %v345_v18 = vadd.f32 %v747_v5, %v274_v8  ;;  %v346_v19 = vadd.f32 %v747_v5, %v275_v9  ;;  %v278_v22 = vmul.f32 %v675_v10, %v739_v1  ;;  %v279_v23 = vmul.f32 %v676_v11, %v739_v1 }
  0x4d   :  { %v407_v24 = vadd.f32 %v343_v12, %v201_v6  ;;  %v408_v25 = vadd.f32 %v344_v13, %v202_v7  ;;  %v347_v26 = vadd.f32 %v747_v5, %v276_v16  ;;  %v348_v27 = vadd.f32 %v747_v5, %v277_v17 }
  0x4e   :  { %v409_v30 = vadd.f32 %v345_v18, %v203_v14  ;;  %v410_v31 = vadd.f32 %v346_v19, %v204_v15  ;;  %v349_v32 = vadd.f32 %v747_v5, %v278_v22  ;;  %v350_v1 = vadd.f32 %v747_v5, %v279_v23 }
  0x4f   :  { %v471_v33 = vmax.f32 %v407_v24, 0.0  ;;  %v472_v34 = vmax.f32 %v408_v25, 0.0  ;;  %v411_v35 = vadd.f32 %v347_v26, %v205_v20  ;;  %v412_v36 = vadd.f32 %v348_v27, %v206_v21 }
  0x50   :  { %v473_v37 = vmax.f32 %v409_v30, 0.0  ;;  %v474_v38 = vmax.f32 %v410_v31, 0.0  ;;  %v413_v39 = vadd.f32 %v349_v32, %v207_v28  ;;  %v414_v40 = vadd.f32 %v350_v1, %v208_v29 }
  0x51   :  { %535 = vst [vmem:[%s1355_s4 + $0x1c0] sm:$0xff] %v471_v33  ;;  %536 = vst [vmem:[%s1355_s4 + $0x1c8] sm:$0xff] %v472_v34  ;;  %v475_v41 = vmax.f32 %v411_v35, 0.0  ;;  %v476_v42 = vmax.f32 %v412_v36, 0.0 }
  0x52   :  { %537 = vst [vmem:[%s1355_s4 + $0x1d0] sm:$0xff] %v473_v37  ;;  %538 = vst [vmem:[%s1355_s4 + $0x1d8] sm:$0xff] %v474_v38  ;;  %v477_v5 = vmax.f32 %v413_v39, 0.0  ;;  %v478_v43 = vmax.f32 %v414_v40, 0.0 }
  0x53   :  { %539 = vst [vmem:[%s1355_s4 + $0x1e0] sm:$0xff] %v475_v41  ;;  %540 = vst [vmem:[%s1355_s4 + $0x1e8] sm:$0xff] %v476_v42 }
  0x54   :  { %541 = vst [vmem:[%s1355_s4 + $0x1f0] sm:$0xff] %v477_v5  ;;  %542 = vst [vmem:[%s1355_s4 + $0x1f8] sm:$0xff] %v478_v43 }

</bundles_post_ra>
